<compile_context>
chip_gen: v7x
topology: tpu7x:2x2x1
jax: 0.10.0
libtpu: 0.0.40
codegen_flags: <defaults>
</compile_context>

<pallas_src>
import functools

import jax
import jax.numpy as jnp
from jax.experimental import pallas as pl
from jax.experimental.pallas import tpu as pltpu


def _round_up(x, m):
    return (x + m - 1) // m * m


def _tpu_defaults():
    """(tile, vmem_limit_bytes) tuned per TPU generation.

    v5e/v6e: 128 MiB VMEM -> 512 tiles, generous 96 MiB scoped limit.
    v7x:      64 MiB VMEM but ~3.2 TB/s HBM -> 1024 tiles (2 MiB adj DMAs) to
              amortize the ~0.35 us per-step overhead, 48 MiB limit (headroom).
    """
    tile, vmem_limit = 512, 48 * 1024 * 1024          # safe on every generation
    try:
        cap = pltpu.get_tpu_info().vmem_capacity_bytes
        if cap >= 100 * 1024 * 1024:                  # v5e / v6e (128 MiB)
            tile, vmem_limit = 512, 96 * 1024 * 1024
        else:                                         # v7x (64 MiB)
            tile, vmem_limit = 1024, 48 * 1024 * 1024
    except Exception:
        pass
    return tile, vmem_limit


# ----------------------------------------------------------------------------
# Fused encoder kernel.
#
# Grid = (stage, i, k):
#   stage 0 : h' = D^-1/2 relu((D^-1/2 (A+I) X') @ W1 + b1)   -> VMEM scratch
#             (X' = D^-1/2 X is pre-scaled in the wrapper)
#   stage 1 : out = (D^-1/2 (A+I) h') @ [W_mu | W_ls] + [b_mu | b_ls]
#   i       : output row tile, k: neighbor column tile (reduction, VMEM f32 acc)
# Stage 1 reads every h row tile written by stage 0, so all axes are
# "arbitrary" (sequential single-core execution).
# ----------------------------------------------------------------------------
def _fused_encoder_kernel(adj_ref, x_ref, d_ref, w1_ref, b1_ref, w23_ref,
                          b23_ref, out_ref, h_ref, acc0_ref, acc1_ref, *,
                          tm, tk, x_resident):
    s = pl.program_id(0)                 # 0: conv1 pass, 1: fused mu||logstd pass
    i = pl.program_id(1)                 # output row tile
    k = pl.program_id(2)                 # adjacency column (neighbor) tile
    last_k = pl.num_programs(2) - 1

    # (A + I) tile streamed as exact 0/1 int8; the VPU upcast hides under DMA.
    a = adj_ref[...].astype(jnp.bfloat16)

    @pl.when(jnp.logical_and(s == 0, k == 0))
    def _():
        acc0_ref[...] = jnp.zeros_like(acc0_ref)

    @pl.when(jnp.logical_and(s == 1, k == 0))
    def _():
        acc1_ref[...] = jnp.zeros_like(acc1_ref)

    # Stage 0: aggregate the D^-1/2-pre-scaled node features (aggregate-first:
    # the N^2-scale matmul contracts the narrow input feature width).
    @pl.when(s == 0)
    def _():
        if x_resident:
            off = pl.multiple_of(k * tk, tk)
            x_k = x_ref[pl.ds(off, tk), :]           # (tk, p_in) bf16
        else:
            x_k = x_ref[...]                         # streamed tile
        acc0_ref[...] += jnp.dot(a, x_k, preferred_element_type=jnp.float32)

    # Stage 1: aggregate the VMEM-resident, already-pre-scaled hidden acts.
    @pl.when(s == 1)
    def _():
        off = pl.multiple_of(k * tk, tk)
        h_k = h_ref[pl.ds(off, tk), :]               # (tk, p_hid) bf16
        acc1_ref[...] += jnp.dot(a, h_k, preferred_element_type=jnp.float32)

    # Stage-0 finalize: remaining D^-1/2 row scale, tiny feature transform,
    # bias + relu, then pre-scale by D^-1/2 again for the next aggregation.
    @pl.when(jnp.logical_and(s == 0, k == last_k))
    def _():
        d_row = d_ref[...]                                   # (tm, 1) f32
        agg = (d_row * acc0_ref[...]).astype(jnp.bfloat16)
        h_t = jnp.dot(agg, w1_ref[...], preferred_element_type=jnp.float32)
        h_t = jnp.maximum(h_t + b1_ref[...], 0.0)
        row = pl.multiple_of(i * tm, tm)
        # Padded rows have d_row == 0 -> exactly zero rows in the scratch.
        h_ref[pl.ds(row, tm), :] = (d_row * h_t).astype(h_ref.dtype)

    # Stage-1 finalize: mu || logstd in one shared adjacency pass.
    @pl.when(jnp.logical_and(s == 1, k == last_k))
    def _():
        d_row = d_ref[...]
        agg = (d_row * acc1_ref[...]).astype(jnp.bfloat16)
        o = jnp.dot(agg, w23_ref[...], preferred_element_type=jnp.float32)
        out_ref[...] = (o + b23_ref[...]).astype(out_ref.dtype)


def encoder_fused(a_i8, d_inv_sqrt, x, w1, b1, w_mu, b_mu, w_ls, b_ls, *,
                  tile=None, vmem_limit_bytes=None):
    """Fused 3-layer GCN encoder. Returns (mu, logstd), each (N, out_channels)."""
    n = a_i8.shape[0]
    fin = x.shape[1]
    hidden = w1.shape[1]
    out_c = w_mu.shape[1]
    f2 = 2 * out_c

    # Independent lane-dense padding of each feature width.
    p_in = _round_up(fin, 128)
    p_hid = _round_up(hidden, 128)
    p_out = _round_up(f2, 128)

    d_tile, d_vmem = _tpu_defaults()
    tile = d_tile if tile is None else tile
    vmem_limit_bytes = d_vmem if vmem_limit_bytes is None else vmem_limit_bytes

    tm = tk = min(tile, _round_up(n, 128))
    n_pad = _round_up(n, tm)
    n_i = n_pad // tm
    n_k = n_pad // tk

    # Keep X fully VMEM-resident when small (removes all re-reads); otherwise
    # stream it during stage 0 only (index frozen during stage 1).
    x_resident = n_pad * p_in * 2 <= 4 * 1024 * 1024

    # Zero padding keeps the math exact: padded rows/cols of (A+I), X', d and
    # the weights contribute nothing to the real outputs.
    adj_p = jnp.zeros((n_pad, n_pad), jnp.int8).at[:n, :n].set(a_i8)
    d_p = jnp.zeros((n_pad, 1), jnp.float32).at[:n, 0].set(d_inv_sqrt)
    x_scaled = (d_inv_sqrt[:, None] * x).astype(jnp.bfloat16)     # X' = D^-1/2 X
    x_p = jnp.zeros((n_pad, p_in), jnp.bfloat16).at[:n, :fin].set(x_scaled)
    w1_p = jnp.zeros((p_in, p_hid), jnp.bfloat16).at[:fin, :hidden].set(
        w1.astype(jnp.bfloat16))
    b1_p = jnp.zeros((1, p_hid), jnp.float32).at[0, :hidden].set(b1)
    # Fuse conv_mu and conv_logstd into a single output pass over the adjacency.
    w23 = jnp.concatenate([w_mu, w_ls], axis=1)                   # (hidden, 2*out)
    b23 = jnp.concatenate([b_mu, b_ls], axis=0)                   # (2*out,)
    w23_p = jnp.zeros((p_hid, p_out), jnp.bfloat16).at[:hidden, :f2].set(
        w23.astype(jnp.bfloat16))
    b23_p = jnp.zeros((1, p_out), jnp.float32).at[0, :f2].set(b23)

    if x_resident:
        x_spec = pl.BlockSpec((n_pad, p_in), lambda s, i, k: (0, 0))
    else:
        # Stage 1 never reads X: freeze its block index so it isn't re-DMAed.
        x_spec = pl.BlockSpec((tk, p_in), lambda s, i, k: (k * (1 - s), 0))

    kernel = functools.partial(_fused_encoder_kernel, tm=tm, tk=tk,
                               x_resident=x_resident)

    out = pl.pallas_call(
        kernel,
        out_shape=jax.ShapeDtypeStruct((n_pad, p_out), jnp.float32),
        grid_spec=pltpu.PrefetchScalarGridSpec(
            num_scalar_prefetch=0,
            grid=(2, n_i, n_k),
            in_specs=[
                pl.BlockSpec((tm, tk), lambda s, i, k: (i, k)),        # (A+I) int8
                x_spec,                                                # X'
                pl.BlockSpec((tm, 1), lambda s, i, k: (i, 0)),         # D^-1/2 rows
                pl.BlockSpec((p_in, p_hid), lambda s, i, k: (0, 0)),   # W1
                pl.BlockSpec((1, p_hid), lambda s, i, k: (0, 0)),      # b1
                pl.BlockSpec((p_hid, p_out), lambda s, i, k: (0, 0)),  # W_mu||W_ls
                pl.BlockSpec((1, p_out), lambda s, i, k: (0, 0)),      # b_mu||b_ls
            ],
            # Freeze the output block index during stage 0 so the pipeline never
            # writes back stale/uninitialized tiles before stage 1 produces them.
            out_specs=pl.BlockSpec((tm, p_out), lambda s, i, k: (i * s, 0)),
            scratch_shapes=[
                pltpu.VMEM((n_pad, p_hid), jnp.bfloat16),  # D^-1/2 h, whole graph
                pltpu.VMEM((tm, p_in), jnp.float32),       # stage-0 accumulator
                pltpu.VMEM((tm, p_hid), jnp.float32),      # stage-1 accumulator
            ],
        ),
        compiler_params=pltpu.CompilerParams(
            # stage & k must be sequential; i stays "arbitrary" because stage 1
            # reads h row tiles written by every i of stage 0.
            # TODO(synk): on v7x (2 TCs) split into two pallas_calls with h
            # passed through HBM so the row-tile axis can be marked "parallel"
            # (megacore), and spill h to HBM for graphs whose (n_pad, p_hid)
            # scratch would not fit the 64 MiB VMEM.
            dimension_semantics=("arbitrary", "arbitrary", "arbitrary"),
            vmem_limit_bytes=vmem_limit_bytes,
        ),
    )(adj_p, x_p, d_p, w1_p, b1_p, w23_p, b23_p)

    mu = out[:n, :out_c]
    logstd = out[:n, out_c:f2]
    return mu, logstd


# ----------------------------------------------------------------------------
# GCN normalization data (dense), matching torch_geometric GCNConv with
# add_self_loops=True:  Ahat = D^-1/2 (A + I) D^-1/2.
# Returns (A + I) as exact int8 plus the D^-1/2 vector; computed ONCE per graph
# (cached=True in the reference module) and reused.
# TODO(synk): for genuinely sparse large graphs, replace the dense O(N^2) build
# and dense matmul with a gather-based aggregation kernel
# (PrefetchScalarGridSpec over neighbor indices).
# ----------------------------------------------------------------------------
def gcn_adjacency(edge_index, num_nodes):
    src = edge_index[0]
    dst = edge_index[1]
    # message flows source -> target, aggregation at target: A[target, source]
    a = jnp.zeros((num_nodes, num_nodes), jnp.float32).at[dst, src].add(1.0)
    a = a + jnp.eye(num_nodes, dtype=jnp.float32)   # append self loops (PyG-style)
    deg = jnp.sum(a, axis=1)
    d_inv_sqrt = jnp.where(deg > 0.0, 1.0 / jnp.sqrt(deg), 0.0)
    return a.astype(jnp.int8), d_inv_sqrt           # entries are small counts: exact


# ----------------------------------------------------------------------------
# Encoder params + forward
# ----------------------------------------------------------------------------
def init_encoder_params(key, in_channels, out_channels):
    hidden = 2 * out_channels

    def glorot(k, fan_in, fan_out):
        limit = jnp.sqrt(6.0 / (fan_in + fan_out))
        return jax.random.uniform(
            k, (fan_in, fan_out), jnp.float32, minval=-limit, maxval=limit
        )

    k1, k2, k3 = jax.random.split(key, 3)
    return {
        "w1": glorot(k1, in_channels, hidden),
        "b1": jnp.zeros((hidden,), jnp.float32),
        "w_mu": glorot(k2, hidden, out_channels),
        "b_mu": jnp.zeros((out_channels,), jnp.float32),
        "w_ls": glorot(k3, hidden, out_channels),
        "b_ls": jnp.zeros((out_channels,), jnp.float32),
    }


def encoder_forward(params, x, a_i8, d_inv_sqrt):
    return encoder_fused(
        a_i8, d_inv_sqrt, x,
        params["w1"], params["b1"],
        params["w_mu"], params["b_mu"],
        params["w_ls"], params["b_ls"],
    )


def encoder_reference(params, x, a_i8, d_inv_sqrt):
    ahat = d_inv_sqrt[:, None] * a_i8.astype(jnp.float32) * d_inv_sqrt[None, :]

    def gcn(h, w, b):
        return ahat @ (h @ w) + b

    h = jax.nn.relu(gcn(x, params["w1"], params["b1"]))
    return (gcn(h, params["w_mu"], params["b_mu"]),
            gcn(h, params["w_ls"], params["b_ls"]))


if __name__ == "__main__":
    num_nodes = 16
    in_channels = 4
    out_channels = 8

    key = jax.random.PRNGKey(0)
    k_x, k_p = jax.random.split(key)

    # node features (N, Fin)
    x = jax.random.normal(k_x, (num_nodes, in_channels), jnp.float32)

    # deterministic bidirectional ring graph: edge_index shape (2, 2N)
    idx = jnp.arange(num_nodes, dtype=jnp.int32)
    nxt = (idx + 1) % num_nodes
    edge_index = jnp.stack(
        [jnp.concatenate([idx, nxt]), jnp.concatenate([nxt, idx])], axis=0
    )

    params = init_encoder_params(k_p, in_channels, out_channels)

    # Hoisted out of the forward path (GCNConv(cached=True) semantics).
    a_i8, d_inv_sqrt = gcn_adjacency(edge_index, num_nodes)

    mu, logstd = jax.jit(encoder_forward)(params, x, a_i8, d_inv_sqrt)
    jax.block_until_ready((mu, logstd))

    assert mu.shape == (num_nodes, out_channels)
    assert logstd.shape == (num_nodes, out_channels)

    # Adjacency is exact int8 now; remaining error is bf16 X'/h'/weights with
    # f32 accumulation.
    mu_ref, logstd_ref = encoder_reference(params, x, a_i8, d_inv_sqrt)
    assert jnp.allclose(mu, mu_ref, atol=0.1, rtol=0.05), "mu mismatch"
    assert jnp.allclose(logstd, logstd_ref, atol=0.1, rtol=0.05), "logstd mismatch"

    print("KERNEL_OK")
</pallas_src>

<mosaic_0001>
module attributes {stable_mosaic.version = 11 : i64} {
  func.func @_fused_encoder_kernel(%arg0: i32, %arg1: i32, %arg2: i32, %arg3: memref<128x128xi8, #tpu.memory_space<vmem>>, %arg4: memref<128x128xbf16, #tpu.memory_space<vmem>>, %arg5: memref<128x1xf32, #tpu.memory_space<vmem>>, %arg6: memref<128x128xbf16, #tpu.memory_space<vmem>>, %arg7: memref<1x128xf32, #tpu.memory_space<vmem>>, %arg8: memref<128x128xbf16, #tpu.memory_space<vmem>>, %arg9: memref<1x128xf32, #tpu.memory_space<vmem>>, %arg10: memref<128x128xf32, #tpu.memory_space<vmem>>, %arg11: memref<128x128xbf16, #tpu.memory_space<vmem>>, %arg12: memref<128x128xf32, #tpu.memory_space<vmem>>, %arg13: memref<128x128xf32, #tpu.memory_space<vmem>>) attributes {dimension_semantics = [#tpu.dimension_semantics<arbitrary>, #tpu.dimension_semantics<arbitrary>, #tpu.dimension_semantics<arbitrary>], iteration_bounds = array<i64: 2, 1, 1>, scalar_prefetch = 0 : i64, scratch_operands = 3 : i64, tpu.core_type = #tpu.core_type<tc>, window_params = [{transform_indices = @transform_0, window_bounds = array<i64: 128, 128>}, {pipeline_mode = #tpu.pipeline_mode<synchronous>, transform_indices = @transform_1, window_bounds = array<i64: 128, 128>}, {transform_indices = @transform_2, window_bounds = array<i64: 128, 1>}, {pipeline_mode = #tpu.pipeline_mode<synchronous>, transform_indices = @transform_3, window_bounds = array<i64: 128, 128>}, {pipeline_mode = #tpu.pipeline_mode<synchronous>, transform_indices = @transform_4, window_bounds = array<i64: 1, 128>}, {pipeline_mode = #tpu.pipeline_mode<synchronous>, transform_indices = @transform_5, window_bounds = array<i64: 128, 128>}, {pipeline_mode = #tpu.pipeline_mode<synchronous>, transform_indices = @transform_6, window_bounds = array<i64: 1, 128>}, {transform_indices = @transform_7, window_bounds = array<i64: 128, 128>}]} {
    %c0 = arith.constant 0 : index
    %c0_0 = arith.constant 0 : index
    %0 = vector.load %arg3[%c0, %c0_0] : memref<128x128xi8, #tpu.memory_space<vmem>>, vector<128x128xi8>
    %1 = arith.sitofp %0 : vector<128x128xi8> to vector<128x128xbf16>
    %c0_i32 = arith.constant 0 : i32
    %2 = arith.cmpi eq, %arg0, %c0_i32 : i32
    %c0_i32_1 = arith.constant 0 : i32
    %3 = arith.cmpi eq, %arg2, %c0_i32_1 : i32
    %4 = arith.andi %2, %3 : i1
    %5 = arith.extui %4 : i1 to i32
    %c0_i32_2 = arith.constant 0 : i32
    %6 = arith.cmpi ne, %5, %c0_i32_2 : i32
    scf.if %6 {
      %cst = arith.constant 0.000000e+00 : f32
      %28 = vector.broadcast %cst : f32 to vector<128x128xf32>
      %c0_15 = arith.constant 0 : index
      %c0_16 = arith.constant 0 : index
      %29 = vector.load %arg12[%c0_15, %c0_16] : memref<128x128xf32, #tpu.memory_space<vmem>>, vector<128x128xf32>
      tpu.vector_store %arg12[%c0_15, %c0_16], %28 {strides = array<i32>} : memref<128x128xf32, #tpu.memory_space<vmem>>, vector<128x128xf32>,
    } else {
    }
    %c1_i32 = arith.constant 1 : i32
    %7 = arith.cmpi eq, %arg0, %c1_i32 : i32
    %c0_i32_3 = arith.constant 0 : i32
    %8 = arith.cmpi eq, %arg2, %c0_i32_3 : i32
    %9 = arith.andi %7, %8 : i1
    %10 = arith.extui %9 : i1 to i32
    %c0_i32_4 = arith.constant 0 : i32
    %11 = arith.cmpi ne, %10, %c0_i32_4 : i32
    scf.if %11 {
      %cst = arith.constant 0.000000e+00 : f32
      %28 = vector.broadcast %cst : f32 to vector<128x128xf32>
      %c0_15 = arith.constant 0 : index
      %c0_16 = arith.constant 0 : index
      %29 = vector.load %arg13[%c0_15, %c0_16] : memref<128x128xf32, #tpu.memory_space<vmem>>, vector<128x128xf32>
      tpu.vector_store %arg13[%c0_15, %c0_16], %28 {strides = array<i32>} : memref<128x128xf32, #tpu.memory_space<vmem>>, vector<128x128xf32>,
    } else {
    }
    %c0_i32_5 = arith.constant 0 : i32
    %12 = arith.cmpi eq, %arg0, %c0_i32_5 : i32
    %13 = arith.extui %12 : i1 to i32
    %c0_i32_6 = arith.constant 0 : i32
    %14 = arith.cmpi ne, %13, %c0_i32_6 : i32
    scf.if %14 {
      %c128_i32 = arith.constant 128 : i32
      %28 = arith.muli %arg2, %c128_i32 : i32
      %29 = tpu.assume_multiple %28, 128 : i32
      %30 = arith.index_cast %29 : i32 to index
      %c0_15 = arith.constant 0 : index
      %31 = vector.load %arg4[%30, %c0_15] : memref<128x128xbf16, #tpu.memory_space<vmem>>, vector<128x128xbf16>
      %c0_16 = arith.constant 0 : index
      %c0_17 = arith.constant 0 : index
      %32 = vector.load %arg12[%c0_16, %c0_17] : memref<128x128xf32, #tpu.memory_space<vmem>>, vector<128x128xf32>
      %cst = arith.constant dense<0.000000e+00> : vector<128x128xf32>
      %33 = tpu.matmul %1, %31, %cst {dimension_numbers = #tpu.dot_dimension_numbers<[1], [0], [0], [1], [0, 0, 1, 1], [], []>} : vector<128x128xbf16>, vector<128x128xbf16>, vector<128x128xf32> -> vector<128x128xf32>
      %34 = arith.addf %32, %33 : vector<128x128xf32>
      %c0_18 = arith.constant 0 : index
      %c0_19 = arith.constant 0 : index
      %35 = vector.load %arg12[%c0_18, %c0_19] : memref<128x128xf32, #tpu.memory_space<vmem>>, vector<128x128xf32>
      tpu.vector_store %arg12[%c0_18, %c0_19], %34 {strides = array<i32>} : memref<128x128xf32, #tpu.memory_space<vmem>>, vector<128x128xf32>,
    } else {
    }
    %c1_i32_7 = arith.constant 1 : i32
    %15 = arith.cmpi eq, %arg0, %c1_i32_7 : i32
    %16 = arith.extui %15 : i1 to i32
    %c0_i32_8 = arith.constant 0 : i32
    %17 = arith.cmpi ne, %16, %c0_i32_8 : i32
    scf.if %17 {
      %c128_i32 = arith.constant 128 : i32
      %28 = arith.muli %arg2, %c128_i32 : i32
      %29 = tpu.assume_multiple %28, 128 : i32
      %30 = arith.index_cast %29 : i32 to index
      %c0_15 = arith.constant 0 : index
      %31 = vector.load %arg11[%30, %c0_15] : memref<128x128xbf16, #tpu.memory_space<vmem>>, vector<128x128xbf16>
      %c0_16 = arith.constant 0 : index
      %c0_17 = arith.constant 0 : index
      %32 = vector.load %arg13[%c0_16, %c0_17] : memref<128x128xf32, #tpu.memory_space<vmem>>, vector<128x128xf32>
      %cst = arith.constant dense<0.000000e+00> : vector<128x128xf32>
      %33 = tpu.matmul %1, %31, %cst {dimension_numbers = #tpu.dot_dimension_numbers<[1], [0], [0], [1], [0, 0, 1, 1], [], []>} : vector<128x128xbf16>, vector<128x128xbf16>, vector<128x128xf32> -> vector<128x128xf32>
      %34 = arith.addf %32, %33 : vector<128x128xf32>
      %c0_18 = arith.constant 0 : index
      %c0_19 = arith.constant 0 : index
      %35 = vector.load %arg13[%c0_18, %c0_19] : memref<128x128xf32, #tpu.memory_space<vmem>>, vector<128x128xf32>
      tpu.vector_store %arg13[%c0_18, %c0_19], %34 {strides = array<i32>} : memref<128x128xf32, #tpu.memory_space<vmem>>, vector<128x128xf32>,
    } else {
    }
    %c0_i32_9 = arith.constant 0 : i32
    %18 = arith.cmpi eq, %arg0, %c0_i32_9 : i32
    %c0_i32_10 = arith.constant 0 : i32
    %19 = arith.cmpi eq, %arg2, %c0_i32_10 : i32
    %20 = arith.andi %18, %19 : i1
    %21 = arith.extui %20 : i1 to i32
    %c0_i32_11 = arith.constant 0 : i32
    %22 = arith.cmpi ne, %21, %c0_i32_11 : i32
    scf.if %22 {
      %c0_15 = arith.constant 0 : index
      %c0_16 = arith.constant 0 : index
      %28 = vector.load %arg5[%c0_15, %c0_16] : memref<128x1xf32, #tpu.memory_space<vmem>>, vector<128x1xf32>
      %c0_17 = arith.constant 0 : index
      %c0_18 = arith.constant 0 : index
      %29 = vector.load %arg12[%c0_17, %c0_18] : memref<128x128xf32, #tpu.memory_space<vmem>>, vector<128x128xf32>
      %30 = vector.broadcast %28 : vector<128x1xf32> to vector<128x128xf32>
      %31 = arith.mulf %30, %29 : vector<128x128xf32>
      %32 = arith.truncf %31 : vector<128x128xf32> to vector<128x128xbf16>
      %c0_19 = arith.constant 0 : index
      %c0_20 = arith.constant 0 : index
      %33 = vector.load %arg6[%c0_19, %c0_20] : memref<128x128xbf16, #tpu.memory_space<vmem>>, vector<128x128xbf16>
      %cst = arith.constant dense<0.000000e+00> : vector<128x128xf32>
      %34 = tpu.matmul %32, %33, %cst {dimension_numbers = #tpu.dot_dimension_numbers<[1], [0], [0], [1], [0, 0, 1, 1], [], []>} : vector<128x128xbf16>, vector<128x128xbf16>, vector<128x128xf32> -> vector<128x128xf32>
      %c0_21 = arith.constant 0 : index
      %c0_22 = arith.constant 0 : index
      %35 = vector.load %arg7[%c0_21, %c0_22] : memref<1x128xf32, #tpu.memory_space<vmem>>, vector<1x128xf32>
      %36 = vector.broadcast %35 : vector<1x128xf32> to vector<128x128xf32>
      %37 = arith.addf %34, %36 : vector<128x128xf32>
      %cst_23 = arith.constant 0.000000e+00 : f32
      %38 = vector.broadcast %cst_23 : f32 to vector<128x128xf32>
      %39 = arith.maximumf %37, %38 : vector<128x128xf32>
      %c128_i32 = arith.constant 128 : i32
      %40 = arith.muli %arg1, %c128_i32 : i32
      %41 = tpu.assume_multiple %40, 128 : i32
      %42 = vector.broadcast %28 : vector<128x1xf32> to vector<128x128xf32>
      %43 = arith.mulf %42, %39 : vector<128x128xf32>
      %44 = arith.truncf %43 : vector<128x128xf32> to vector<128x128xbf16>
      %45 = arith.index_cast %41 : i32 to index
      %c0_24 = arith.constant 0 : index
      %46 = vector.load %arg11[%45, %c0_24] : memref<128x128xbf16, #tpu.memory_space<vmem>>, vector<128x128xbf16>
      tpu.vector_store %arg11[%45, %c0_24], %44 {strides = array<i32>} : memref<128x128xbf16, #tpu.memory_space<vmem>>, vector<128x128xbf16>,
    } else {
    }
    %c1_i32_12 = arith.constant 1 : i32
    %23 = arith.cmpi eq, %arg0, %c1_i32_12 : i32
    %c0_i32_13 = arith.constant 0 : i32
    %24 = arith.cmpi eq, %arg2, %c0_i32_13 : i32
    %25 = arith.andi %23, %24 : i1
    %26 = arith.extui %25 : i1 to i32
    %c0_i32_14 = arith.constant 0 : i32
    %27 = arith.cmpi ne, %26, %c0_i32_14 : i32
    scf.if %27 {
      %c0_15 = arith.constant 0 : index
      %c0_16 = arith.constant 0 : index
      %28 = vector.load %arg5[%c0_15, %c0_16] : memref<128x1xf32, #tpu.memory_space<vmem>>, vector<128x1xf32>
      %c0_17 = arith.constant 0 : index
      %c0_18 = arith.constant 0 : index
      %29 = vector.load %arg13[%c0_17, %c0_18] : memref<128x128xf32, #tpu.memory_space<vmem>>, vector<128x128xf32>
      %30 = vector.broadcast %28 : vector<128x1xf32> to vector<128x128xf32>
      %31 = arith.mulf %30, %29 : vector<128x128xf32>
      %32 = arith.truncf %31 : vector<128x128xf32> to vector<128x128xbf16>
      %c0_19 = arith.constant 0 : index
      %c0_20 = arith.constant 0 : index
      %33 = vector.load %arg8[%c0_19, %c0_20] : memref<128x128xbf16, #tpu.memory_space<vmem>>, vector<128x128xbf16>
      %cst = arith.constant dense<0.000000e+00> : vector<128x128xf32>
      %34 = tpu.matmul %32, %33, %cst {dimension_numbers = #tpu.dot_dimension_numbers<[1], [0], [0], [1], [0, 0, 1, 1], [], []>} : vector<128x128xbf16>, vector<128x128xbf16>, vector<128x128xf32> -> vector<128x128xf32>
      %c0_21 = arith.constant 0 : index
      %c0_22 = arith.constant 0 : index
      %35 = vector.load %arg9[%c0_21, %c0_22] : memref<1x128xf32, #tpu.memory_space<vmem>>, vector<1x128xf32>
      %36 = vector.broadcast %35 : vector<1x128xf32> to vector<128x128xf32>
      %37 = arith.addf %34, %36 : vector<128x128xf32>
      %c0_23 = arith.constant 0 : index
      %c0_24 = arith.constant 0 : index
      %38 = vector.load %arg10[%c0_23, %c0_24] : memref<128x128xf32, #tpu.memory_space<vmem>>, vector<128x128xf32>
      tpu.vector_store %arg10[%c0_23, %c0_24], %37 {strides = array<i32>} : memref<128x128xf32, #tpu.memory_space<vmem>>, vector<128x128xf32>,
    } else {
    }
    return
  }
  func.func @transform_0(%arg0: i32, %arg1: i32, %arg2: i32) -> (i32, i32) {
    %c0_i32 = arith.constant 0 : i32
    return %arg1, %arg2 : i32, i32
  }
  func.func @transform_1(%arg0: i32, %arg1: i32, %arg2: i32) -> (i32, i32) {
    %c0_i32 = arith.constant 0 : i32
    %c0_i32_0 = arith.constant 0 : i32
    %c0_i32_1 = arith.constant 0 : i32
    return %c0_i32, %c0_i32_0 : i32, i32
  }
  func.func @transform_2(%arg0: i32, %arg1: i32, %arg2: i32) -> (i32, i32) {
    %c0_i32 = arith.constant 0 : i32
    %c0_i32_0 = arith.constant 0 : i32
    return %arg1, %c0_i32 : i32, i32
  }
  func.func @transform_3(%arg0: i32, %arg1: i32, %arg2: i32) -> (i32, i32) {
    %c0_i32 = arith.constant 0 : i32
    %c0_i32_0 = arith.constant 0 : i32
    %c0_i32_1 = arith.constant 0 : i32
    return %c0_i32, %c0_i32_0 : i32, i32
  }
  func.func @transform_4(%arg0: i32, %arg1: i32, %arg2: i32) -> (i32, i32) {
    %c0_i32 = arith.constant 0 : i32
    %c0_i32_0 = arith.constant 0 : i32
    %c0_i32_1 = arith.constant 0 : i32
    return %c0_i32, %c0_i32_0 : i32, i32
  }
  func.func @transform_5(%arg0: i32, %arg1: i32, %arg2: i32) -> (i32, i32) {
    %c0_i32 = arith.constant 0 : i32
    %c0_i32_0 = arith.constant 0 : i32
    %c0_i32_1 = arith.constant 0 : i32
    return %c0_i32, %c0_i32_0 : i32, i32
  }
  func.func @transform_6(%arg0: i32, %arg1: i32, %arg2: i32) -> (i32, i32) {
    %c0_i32 = arith.constant 0 : i32
    %c0_i32_0 = arith.constant 0 : i32
    %c0_i32_1 = arith.constant 0 : i32
    return %c0_i32, %c0_i32_0 : i32, i32
  }
  func.func @transform_7(%arg0: i32, %arg1: i32, %arg2: i32) -> (i32, i32) {
    %0 = arith.muli %arg1, %arg0 : i32
    %c0_i32 = arith.constant 0 : i32
    %c0_i32_0 = arith.constant 0 : i32
    return %0, %c0_i32 : i32, i32
  }
}

</mosaic_0001>

<bundles_post_ra>
// kernel: encoder_forward.1
= control target key start
LH: loop header
LB: loop body
LE: loop exit
PB: predicated region body
PF: predicated region fallthrough
CT: control target
= control target key end

     0   :  { %s1974_s24 = smov 0   ;;  %s1976_s25 = smov 0   ;;  %s2379_s0 = inlined_call_operand.vmem [shape: s8[128,128], index: 0, kind: input, shape index: {}]   ;;  %s2380_s1 = inlined_call_operand.vmem [shape: bf16[128,128], index: 1, kind: input, shape index: {}]   ;;  %s2381_s2 = inlined_call_operand.vmem [shape: f32[128,1], index: 2, kind: input, shape index: {}]   ;;  %s2382_s3 = inlined_call_operand.vmem [shape: bf16[128,128], index: 3, kind: input, shape index: {}]   ;;  %s2383_s4 = inlined_call_operand.vmem [shape: f32[1,128], index: 4, kind: input, shape index: {}]   ;;  %s2384_s5 = inlined_call_operand.vmem [shape: bf16[128,128], index: 5, kind: input, shape index: {}]   ;;  %s2385_s6 = inlined_call_operand.vmem [shape: f32[1,128], index: 6, kind: input, shape index: {}]   ;;  %s2386_s7 = inlined_call_operand.vmem [shape: f32[128,128], index: 7, kind: output, shape index: {}]  }
   0x1   :  { %s1978_s26 = smov 0  }
   0x2 LB: > { %s36_s27 = sadd.s32 1, %s1924_s25  ;;  %p1557_p0 = scmp.ge.s32.totalorder %s1928_s26, 1  ;;  %s1928_s26 = sphi %s1978_s26, %s17_s26   ;;  %s1924_s25 = sphi %s1976_s25, %s2388_s25   ;;  %s1920_s24 = sphi %s1974_s24, %s2387_s24  }
   0x3   : > { %p38_p1 = scmp.ge.s32.totalorder %s36_s27, 2  ;;  %p275_p2 = scmp.lt.s32.totalorder %s1928_s26, 3 }
   0x5   : > { %s2390_s27 = smov (%p38_p1, %s36_s27), 0  ;;  %p276_p3 = pnand %p1557_p0, %p275_p2 }
   0x6   : > { %v1997_v0 = vld [vmem:[%s2379_s0] sm:$0xff] (!%p276_p3)  ;;  %v2002_v1 = vld [vmem:[%s2379_s0 + $0x8] sm:$0xff] (!%p276_p3)  ;;  %v2007_v2 = vld [vmem:[%s2379_s0 + $0x10] sm:$0xff] (!%p276_p3)  ;;  %p352_p4 = scmp.eq.s32.totalorder (!%p276_p3), %s1920_s24, 0 }
   0x7   : > { %279 = sbr.rel (%p276_p3) target bundleno = 1319 (0x527), region = 48  ;;  %v2013_v3 = vld [vmem:[%s2379_s0 + $0x18] sm:$0xff] (!%p276_p3)  ;;  %v344_v4 = vunpack.c.l.s8.bf16 (!%p276_p3), %v1997_v0  ;;  %v345_v5 = vunpack.c.h.s8.bf16 (!%p276_p3), %v1997_v0  ;;  %v346_v6 = vunpack.c.l.s8.bf16 (!%p276_p3), %v2002_v1  ;;  %v347_v7 = vunpack.c.h.s8.bf16 (!%p276_p3), %v2002_v1 }
   0x8   : > { %v348_v8 = vunpack.c.l.s8.bf16 (!%p276_p3), %v2007_v2  ;;  %v349_v9 = vunpack.c.h.s8.bf16 (!%p276_p3), %v2007_v2  ;;  %v350_v10 = vunpack.c.l.s8.bf16 (!%p276_p3), %v2013_v3  ;;  %v351_v11 = vunpack.c.h.s8.bf16 (!%p276_p3), %v2013_v3 }
   0xe   : > { %357 = sbr.rel (!%p352_p4) target bundleno = 23 (0x17), region = 52  ;;  %v1930_v12 = vmov (%p352_p4), 0.0  }
   0xf   : > { %358 = vst [vmem:[#allocation3] sm:$0xff] (%p352_p4), %v1930_v12  ;;  %359 = vst [vmem:[#allocation3 + $0x8] sm:$0xff] (%p352_p4), %v1930_v12 }
  0x10   : > { %360 = vst [vmem:[#allocation3 + $0x10] sm:$0xff] (%p352_p4), %v1930_v12  ;;  %361 = vst [vmem:[#allocation3 + $0x18] sm:$0xff] (%p352_p4), %v1930_v12 }
  0x11   : > { %362 = vst [vmem:[#allocation3 + $0x20] sm:$0xff] (%p352_p4), %v1930_v12  ;;  %363 = vst [vmem:[#allocation3 + $0x28] sm:$0xff] (%p352_p4), %v1930_v12 }
  0x12   : > { %364 = vst [vmem:[#allocation3 + $0x30] sm:$0xff] (%p352_p4), %v1930_v12  ;;  %365 = vst [vmem:[#allocation3 + $0x38] sm:$0xff] (%p352_p4), %v1930_v12 }
  0x13   : > { %366 = vst [vmem:[#allocation3 + $0x40] sm:$0xff] (%p352_p4), %v1930_v12  ;;  %367 = vst [vmem:[#allocation3 + $0x48] sm:$0xff] (%p352_p4), %v1930_v12 }
  0x14   : > { %368 = vst [vmem:[#allocation3 + $0x50] sm:$0xff] (%p352_p4), %v1930_v12  ;;  %369 = vst [vmem:[#allocation3 + $0x58] sm:$0xff] (%p352_p4), %v1930_v12 }
  0x15   : > { %370 = vst [vmem:[#allocation3 + $0x60] sm:$0xff] %v1930_v12  ;;  %371 = vst [vmem:[#allocation3 + $0x68] sm:$0xff] %v1930_v12 }
  0x16   : > { %372 = vst [vmem:[#allocation3 + $0x70] sm:$0xff] %v1930_v12  ;;  %373 = vst [vmem:[#allocation3 + $0x78] sm:$0xff] %v1930_v12 }
  0x17 PF: > { %p374_p5 = scmp.eq.s32.totalorder %s1920_s24, 1 }
  0x18   : > { %v1931_v13 = vmov (%p374_p5), 0.0  }
  0x19   : > { %378 = sbr.rel (!%p374_p5) target bundleno = 33 (0x21), region = 56  ;;  %379 = vst [vmem:[#allocation4] sm:$0xff] (%p374_p5), %v1931_v13  ;;  %380 = vst [vmem:[#allocation4 + $0x8] sm:$0xff] (%p374_p5), %v1931_v13 }
  0x1a   : > { %381 = vst [vmem:[#allocation4 + $0x10] sm:$0xff] (%p374_p5), %v1931_v13  ;;  %382 = vst [vmem:[#allocation4 + $0x18] sm:$0xff] (%p374_p5), %v1931_v13 }
  0x1b   : > { %383 = vst [vmem:[#allocation4 + $0x20] sm:$0xff] (%p374_p5), %v1931_v13  ;;  %384 = vst [vmem:[#allocation4 + $0x28] sm:$0xff] (%p374_p5), %v1931_v13 }
  0x1c   : > { %385 = vst [vmem:[#allocation4 + $0x30] sm:$0xff] (%p374_p5), %v1931_v13  ;;  %386 = vst [vmem:[#allocation4 + $0x38] sm:$0xff] (%p374_p5), %v1931_v13 }
  0x1d   : > { %387 = vst [vmem:[#allocation4 + $0x40] sm:$0xff] (%p374_p5), %v1931_v13  ;;  %388 = vst [vmem:[#allocation4 + $0x48] sm:$0xff] (%p374_p5), %v1931_v13 }
  0x1e   : > { %389 = vst [vmem:[#allocation4 + $0x50] sm:$0xff] (%p374_p5), %v1931_v13  ;;  %390 = vst [vmem:[#allocation4 + $0x58] sm:$0xff] (%p374_p5), %v1931_v13 }
  0x1f   : > { %391 = vst [vmem:[#allocation4 + $0x60] sm:$0xff] (%p374_p5), %v1931_v13  ;;  %392 = vst [vmem:[#allocation4 + $0x68] sm:$0xff] (%p374_p5), %v1931_v13 }
  0x20   : > { %393 = vst [vmem:[#allocation4 + $0x70] sm:$0xff] %v1931_v13  ;;  %394 = vst [vmem:[#allocation4 + $0x78] sm:$0xff] %v1931_v13 }
  0x21 PF: > { %p1560_p6 = scmp.ne.s32.totalorder %s1920_s24, 0 }
  0x22   : > { %v1878_v14 = vld [vmem:[%s2380_s1] sm:$0xff] (!%p1560_p6)   ;;  %1674 = vmatprep.mubr.bf16.mxu0 (!%p1560_p6), %v344_v4  ;;  %1682 = vmatprep.mubr.bf16.mxu1 (!%p1560_p6), %v348_v8  ;;  %v1879_v15 = vld [vmem:[%s2380_s1 + $0x8] sm:$0xff] (!%p1560_p6)   ;;  %v1880_v16 = vld [vmem:[%s2380_s1 + $0x10] sm:$0xff] (!%p1560_p6)  }
  0x23   : > { %397 = sbr.rel (%p1560_p6) target bundleno = 293 (0x125), region = 60  ;;  %1658 = vmatprep.subr.bf16.mxu0 (!%p1560_p6), %v1878_v14  ;;  %1786 = vmatprep.subr.bf16.mxu1 (!%p1560_p6), %v1878_v14  ;;  %v1881_v17 = vld [vmem:[%s2380_s1 + $0x18] sm:$0xff] (!%p1560_p6)   ;;  %v1882_v18 = vld [vmem:[%s2380_s1 + $0x20] sm:$0xff] (!%p1560_p6)   ;;  %v1883_v19 = vld [vmem:[%s2380_s1 + $0x28] sm:$0xff] (!%p1560_p6)  }
  0x24   : > { %1659 = vmatpush3.bf16.msra.mxu0 (!%p1560_p6), %v1878_v14  ;;  %1794 = vmatpush3.bf16.msra.mxu1 (!%p1560_p6), %v1878_v14  ;;  %v1884_v20 = vld [vmem:[%s2380_s1 + $0x30] sm:$0xff] (!%p1560_p6)   ;;  %v1885_v21 = vld [vmem:[%s2380_s1 + $0x38] sm:$0xff] (!%p1560_p6)   ;;  %v419_v24 = vld [vmem:[#allocation3] sm:$0xff] (!%p1560_p6) }
  0x25   : > { %1660 = vmatprep.subr.bf16.mxu0 (!%p1560_p6), %v1879_v15  ;;  %1787 = vmatprep.subr.bf16.mxu1 (!%p1560_p6), %v1879_v15  ;;  %v421_v22 = vld [vmem:[#allocation3 + $0x10] sm:$0xff] (!%p1560_p6)  ;;  %v427_v25 = vld [vmem:[#allocation3 + $0x40] sm:$0xff] (!%p1560_p6)  ;;  %v422_v28 = vld [vmem:[#allocation3 + $0x18] sm:$0xff] (!%p1560_p6) }
  0x26   : > { %v429_v23 = vld [vmem:[#allocation3 + $0x50] sm:$0xff] (!%p1560_p6)  ;;  %v430_v29 = vld [vmem:[#allocation3 + $0x58] sm:$0xff] (!%p1560_p6)  ;;  %v420_v34 = vld [vmem:[#allocation3 + $0x8] sm:$0xff] (!%p1560_p6) }
  0x27   : > { %v428_v35 = vld [vmem:[#allocation3 + $0x48] sm:$0xff] (!%p1560_p6)  ;;  %v425_v46 = vld [vmem:[#allocation3 + $0x30] sm:$0xff] (!%p1560_p6)  ;;  %v423_v48 = vld [vmem:[#allocation3 + $0x20] sm:$0xff] (!%p1560_p6) }
  0x28   : > { %1661 = vmatpush3.bf16.msra.mxu0 (!%p1560_p6), %v1879_v15  ;;  %1795 = vmatpush3.bf16.msra.mxu1 (!%p1560_p6), %v1879_v15  ;;  %v433_v47 = vld [vmem:[#allocation3 + $0x70] sm:$0xff] (!%p1560_p6)  ;;  %v431_v49 = vld [vmem:[#allocation3 + $0x60] sm:$0xff] (!%p1560_p6)  ;;  %v426_v52 = vld [vmem:[#allocation3 + $0x38] sm:$0xff] (!%p1560_p6) }
  0x29   : > { %1662 = vmatprep.subr.bf16.mxu0 (!%p1560_p6), %v1880_v16  ;;  %1788 = vmatprep.subr.bf16.mxu1 (!%p1560_p6), %v1880_v16  ;;  %v434_v53 = vld [vmem:[#allocation3 + $0x78] sm:$0xff] (!%p1560_p6)  ;;  %v424_v58 = vld [vmem:[#allocation3 + $0x28] sm:$0xff] (!%p1560_p6) }
  0x2a   : > { %v432_v59 = vld [vmem:[#allocation3 + $0x68] sm:$0xff] }
  0x2c   : > { %1663 = vmatpush3.bf16.msra.mxu0 %v1880_v16  ;;  %1796 = vmatpush3.bf16.msra.mxu1 %v1880_v16 }
  0x2d   : > { %1664 = vmatprep.subr.bf16.mxu0 %v1881_v17  ;;  %1789 = vmatprep.subr.bf16.mxu1 %v1881_v17 }
  0x30   : > { %1665 = vmatpush3.bf16.msra.mxu0 %v1881_v17  ;;  %1797 = vmatpush3.bf16.msra.mxu1 %v1881_v17 }
  0x31   : > { %1666 = vmatprep.subr.bf16.mxu0 %v1882_v18  ;;  %1790 = vmatprep.subr.bf16.mxu1 %v1882_v18 }
  0x34   : > { %1667 = vmatpush3.bf16.msra.mxu0 %v1882_v18  ;;  %1798 = vmatpush3.bf16.msra.mxu1 %v1882_v18 }
  0x35   : > { %1668 = vmatprep.subr.bf16.mxu0 %v1883_v19  ;;  %1791 = vmatprep.subr.bf16.mxu1 %v1883_v19 }
  0x38   : > { %1669 = vmatpush3.bf16.msra.mxu0 %v1883_v19  ;;  %1799 = vmatpush3.bf16.msra.mxu1 %v1883_v19 }
  0x39   : > { %1670 = vmatprep.subr.bf16.mxu0 %v1884_v20  ;;  %1792 = vmatprep.subr.bf16.mxu1 %v1884_v20 }
  0x3c   : > { %1671 = vmatpush3.bf16.msra.mxu0 %v1884_v20  ;;  %1800 = vmatpush3.bf16.msra.mxu1 %v1884_v20 }
  0x3d   : > { %1672 = vmatprep.subr.bf16.mxu0 %v1885_v21  ;;  %1793 = vmatprep.subr.bf16.mxu1 %v1885_v21 }
  0x40   : > { %1673 = vmatpush3.bf16.msra.mxu0 %v1885_v21  ;;  %1801 = vmatpush3.bf16.msra.mxu1 %v1885_v21 }
  0x43   : > { %1675 = vmatmul.mubr.bf16.vlgmr.msra.gmra.mrb[0].mxu0 %v345_v5  ;;  %1683 = vmatmul.mubr.bf16.vlgmr.msra.gmra.mrb[0].mxu1 %v349_v9 }
  0x44   : > { %1678 = vmatprep.mubr.bf16.mxu0 %v346_v6  ;;  %1686 = vmatprep.mubr.bf16.mxu1 %v350_v10 }
  0x4b   : > { %1679 = vmatmul.mubr.bf16.gmra.mrb[4].mxu0 %v347_v7  ;;  %1687 = vmatmul.mubr.bf16.gmra.mrb[4].mxu1 %v351_v11 }
 0x116   : > { %v1676_v26 = vpop.f32.mrb[0].mxu0  ;;  %v1684_v27 = vpop.f32.mrb[0].mxu1 }
 0x117   : > { %v582_v30 = vadd.f32 %v1676_v26, %v421_v22  ;;  %v590_v31 = vadd.f32 %v1684_v27, %v429_v23  ;;  %v517_v32 = vpop.f32.mrb[1].mxu0  ;;  %v549_v33 = vpop.f32.mrb[1].mxu1 }
 0x118   : > { %v580_v36 = vadd.f32 %v517_v32, %v419_v24  ;;  %v588_v37 = vadd.f32 %v549_v33, %v427_v25  ;;  %v1677_v38 = vpop.f32.mrb[2].mxu0  ;;  %v1685_v39 = vpop.f32.mrb[2].mxu1 }
 0x119   : > { %598 = vst [vmem:[#allocation3 + $0x10] sm:$0xff] %v582_v30  ;;  %606 = vst [vmem:[#allocation3 + $0x50] sm:$0xff] %v590_v31  ;;  %v583_v40 = vadd.f32 %v1677_v38, %v422_v28  ;;  %v591_v41 = vadd.f32 %v1685_v39, %v430_v29  ;;  %v520_v42 = vpop.f32.mrb[3].mxu0  ;;  %v552_v43 = vpop.f32.mrb[3].mxu1 }
 0x11a   : > { %596 = vst [vmem:[#allocation3] sm:$0xff] %v580_v36  ;;  %604 = vst [vmem:[#allocation3 + $0x40] sm:$0xff] %v588_v37  ;;  %v581_v44 = vadd.f32 %v520_v42, %v420_v34  ;;  %v589_v45 = vadd.f32 %v552_v43, %v428_v35 }
 0x11b   : > { %599 = vst [vmem:[#allocation3 + $0x18] sm:$0xff] %v583_v40  ;;  %607 = vst [vmem:[#allocation3 + $0x58] sm:$0xff] %v591_v41 }
 0x11c   : > { %597 = vst [vmem:[#allocation3 + $0x8] sm:$0xff] %v581_v44  ;;  %605 = vst [vmem:[#allocation3 + $0x48] sm:$0xff] %v589_v45 }
 0x11e   : > { %v1680_v50 = vpop.f32.mrb[4].mxu0  ;;  %v1688_v51 = vpop.f32.mrb[4].mxu1 }
 0x11f   : > { %v586_v54 = vadd.f32 %v1680_v50, %v425_v46  ;;  %v594_v55 = vadd.f32 %v1688_v51, %v433_v47  ;;  %v533_v56 = vpop.f32.mrb[5].mxu0  ;;  %v565_v57 = vpop.f32.mrb[5].mxu1 }
 0x120   : > { %v584_v60 = vadd.f32 %v533_v56, %v423_v48  ;;  %v592_v61 = vadd.f32 %v565_v57, %v431_v49  ;;  %v1681_v62 = vpop.f32.mrb[6].mxu0  ;;  %v1689_v63 = vpop.f32.mrb[6].mxu1 }
 0x121   : > { %602 = vst [vmem:[#allocation3 + $0x30] sm:$0xff] %v586_v54  ;;  %610 = vst [vmem:[#allocation3 + $0x70] sm:$0xff] %v594_v55  ;;  %v587_v12 = vadd.f32 %v1681_v62, %v426_v52  ;;  %v595_v13 = vadd.f32 %v1689_v63, %v434_v53  ;;  %v536_v14 = vpop.f32.mrb[7].mxu0  ;;  %v568_v15 = vpop.f32.mrb[7].mxu1 }
 0x122   : > { %600 = vst [vmem:[#allocation3 + $0x20] sm:$0xff] %v584_v60  ;;  %608 = vst [vmem:[#allocation3 + $0x60] sm:$0xff] %v592_v61  ;;  %v585_v16 = vadd.f32 %v536_v14, %v424_v58  ;;  %v593_v17 = vadd.f32 %v568_v15, %v432_v59 }
 0x123   : > { %603 = vst [vmem:[#allocation3 + $0x38] sm:$0xff] %v587_v12  ;;  %611 = vst [vmem:[#allocation3 + $0x78] sm:$0xff] %v595_v13 }
 0x124   : > { %601 = vst [vmem:[#allocation3 + $0x28] sm:$0xff] %v585_v16  ;;  %609 = vst [vmem:[#allocation3 + $0x68] sm:$0xff] %v593_v17 }
 0x125 PF: > { %p1569_p7 = scmp.ne.s32.totalorder %s1920_s24, 1 }
 0x126   : > { %v620_v18 = vld [vmem:[#allocation2] sm:$0xff] (!%p1569_p7)  ;;  %v621_v19 = vld [vmem:[#allocation2 + $0x8] sm:$0xff] (!%p1569_p7)  ;;  %1706 = vmatprep.mubr.bf16.mxu0 (!%p1569_p7), %v344_v4  ;;  %1714 = vmatprep.mubr.bf16.mxu1 (!%p1569_p7), %v348_v8  ;;  %v622_v20 = vld [vmem:[#allocation2 + $0x10] sm:$0xff] (!%p1569_p7) }
 0x127   : > { %614 = sbr.rel (%p1569_p7) target bundleno = 553 (0x229), region = 64  ;;  %1690 = vmatprep.subr.bf16.mxu0 (!%p1569_p7), %v620_v18  ;;  %1802 = vmatprep.subr.bf16.mxu1 (!%p1569_p7), %v620_v18  ;;  %v623_v21 = vld [vmem:[#allocation2 + $0x18] sm:$0xff] (!%p1569_p7)  ;;  %v624_v4 = vld [vmem:[#allocation2 + $0x20] sm:$0xff] (!%p1569_p7)  ;;  %v625_v8 = vld [vmem:[#allocation2 + $0x28] sm:$0xff] (!%p1569_p7) }
 0x128   : > { %1691 = vmatpush3.bf16.msra.mxu0 (!%p1569_p7), %v620_v18  ;;  %1810 = vmatpush3.bf16.msra.mxu1 (!%p1569_p7), %v620_v18  ;;  %v626_v22 = vld [vmem:[#allocation2 + $0x30] sm:$0xff] (!%p1569_p7)  ;;  %v627_v23 = vld [vmem:[#allocation2 + $0x38] sm:$0xff] (!%p1569_p7)  ;;  %v628_v26 = vld [vmem:[#allocation4] sm:$0xff] (!%p1569_p7) }
 0x129   : > { %1692 = vmatprep.subr.bf16.mxu0 (!%p1569_p7), %v621_v19  ;;  %1803 = vmatprep.subr.bf16.mxu1 (!%p1569_p7), %v621_v19  ;;  %v630_v24 = vld [vmem:[#allocation4 + $0x10] sm:$0xff] (!%p1569_p7)  ;;  %v636_v0 = vld [vmem:[#allocation4 + $0x40] sm:$0xff] (!%p1569_p7)  ;;  %v631_v2 = vld [vmem:[#allocation4 + $0x18] sm:$0xff] (!%p1569_p7) }
 0x12a   : > { %v638_v25 = vld [vmem:[#allocation4 + $0x50] sm:$0xff] (!%p1569_p7)  ;;  %v629_v31 = vld [vmem:[#allocation4 + $0x8] sm:$0xff] (!%p1569_p7)  ;;  %v632_v40 = vld [vmem:[#allocation4 + $0x20] sm:$0xff] (!%p1569_p7) }
 0x12b   : > { %v634_v38 = vld [vmem:[#allocation4 + $0x30] sm:$0xff] (!%p1569_p7)  ;;  %v640_v41 = vld [vmem:[#allocation4 + $0x60] sm:$0xff] (!%p1569_p7)  ;;  %v635_v44 = vld [vmem:[#allocation4 + $0x38] sm:$0xff] (!%p1569_p7) }
 0x12c   : > { %1693 = vmatpush3.bf16.msra.mxu0 (!%p1569_p7), %v621_v19  ;;  %1811 = vmatpush3.bf16.msra.mxu1 (!%p1569_p7), %v621_v19  ;;  %v642_v39 = vld [vmem:[#allocation4 + $0x70] sm:$0xff] (!%p1569_p7)  ;;  %v643_v45 = vld [vmem:[#allocation4 + $0x78] sm:$0xff] (!%p1569_p7)  ;;  %v633_v50 = vld [vmem:[#allocation4 + $0x28] sm:$0xff] (!%p1569_p7) }
 0x12d   : > { %1694 = vmatprep.subr.bf16.mxu0 (!%p1569_p7), %v622_v20  ;;  %1804 = vmatprep.subr.bf16.mxu1 (!%p1569_p7), %v622_v20  ;;  %v641_v51 = vld [vmem:[#allocation4 + $0x68] sm:$0xff] (!%p1569_p7) }
 0x130   : > { %1695 = vmatpush3.bf16.msra.mxu0 %v622_v20  ;;  %1812 = vmatpush3.bf16.msra.mxu1 %v622_v20 }
 0x131   : > { %1696 = vmatprep.subr.bf16.mxu0 %v623_v21  ;;  %1805 = vmatprep.subr.bf16.mxu1 %v623_v21 }
 0x134   : > { %1697 = vmatpush3.bf16.msra.mxu0 %v623_v21  ;;  %1813 = vmatpush3.bf16.msra.mxu1 %v623_v21 }
 0x135   : > { %1698 = vmatprep.subr.bf16.mxu0 %v624_v4  ;;  %1806 = vmatprep.subr.bf16.mxu1 %v624_v4 }
 0x138   : > { %1699 = vmatpush3.bf16.msra.mxu0 %v624_v4  ;;  %1814 = vmatpush3.bf16.msra.mxu1 %v624_v4 }
 0x139   : > { %1700 = vmatprep.subr.bf16.mxu0 %v625_v8  ;;  %1807 = vmatprep.subr.bf16.mxu1 %v625_v8 }
 0x13c   : > { %1701 = vmatpush3.bf16.msra.mxu0 %v625_v8  ;;  %1815 = vmatpush3.bf16.msra.mxu1 %v625_v8 }
 0x13d   : > { %1702 = vmatprep.subr.bf16.mxu0 %v626_v22  ;;  %1808 = vmatprep.subr.bf16.mxu1 %v626_v22 }
 0x140   : > { %1703 = vmatpush3.bf16.msra.mxu0 %v626_v22  ;;  %1816 = vmatpush3.bf16.msra.mxu1 %v626_v22 }
 0x141   : > { %1704 = vmatprep.subr.bf16.mxu0 %v627_v23  ;;  %1809 = vmatprep.subr.bf16.mxu1 %v627_v23 }
 0x144   : > { %1705 = vmatpush3.bf16.msra.mxu0 %v627_v23  ;;  %1817 = vmatpush3.bf16.msra.mxu1 %v627_v23 }
 0x147   : > { %1707 = vmatmul.mubr.bf16.vlgmr.msra.gmra.mrb[0].mxu0 %v345_v5  ;;  %1715 = vmatmul.mubr.bf16.vlgmr.msra.gmra.mrb[0].mxu1 %v349_v9  ;;  %v639_v9 = vld [vmem:[#allocation4 + $0x58] sm:$0xff] }
 0x148   : > { %1710 = vmatprep.mubr.bf16.mxu0 %v346_v6  ;;  %1718 = vmatprep.mubr.bf16.mxu1 %v350_v10  ;;  %v637_v10 = vld [vmem:[#allocation4 + $0x48] sm:$0xff] }
 0x14f   : > { %1711 = vmatmul.mubr.bf16.gmra.mrb[4].mxu0 %v347_v7  ;;  %1719 = vmatmul.mubr.bf16.gmra.mrb[4].mxu1 %v351_v11 }
 0x21a   : > { %v1708_v5 = vpop.f32.mrb[0].mxu0  ;;  %v1716_v27 = vpop.f32.mrb[0].mxu1 }
 0x21b   : > { %v743_v28 = vadd.f32 %v1708_v5, %v630_v24  ;;  %v751_v29 = vadd.f32 %v1716_v27, %v638_v25  ;;  %v678_v6 = vpop.f32.mrb[1].mxu0  ;;  %v710_v30 = vpop.f32.mrb[1].mxu1 }
 0x21c   : > { %v741_v32 = vadd.f32 %v678_v6, %v628_v26  ;;  %v749_v1 = vadd.f32 %v710_v30, %v636_v0  ;;  %v1709_v7 = vpop.f32.mrb[2].mxu0  ;;  %v1717_v33 = vpop.f32.mrb[2].mxu1 }
 0x21d   : > { %759 = vst [vmem:[#allocation4 + $0x10] sm:$0xff] %v743_v28  ;;  %767 = vst [vmem:[#allocation4 + $0x50] sm:$0xff] %v751_v29  ;;  %v744_v3 = vadd.f32 %v1709_v7, %v631_v2  ;;  %v752_v11 = vadd.f32 %v1717_v33, %v639_v9  ;;  %v681_v34 = vpop.f32.mrb[3].mxu0  ;;  %v713_v35 = vpop.f32.mrb[3].mxu1 }
 0x21e   : > { %757 = vst [vmem:[#allocation4] sm:$0xff] %v741_v32  ;;  %765 = vst [vmem:[#allocation4 + $0x40] sm:$0xff] %v749_v1  ;;  %v742_v36 = vadd.f32 %v681_v34, %v629_v31  ;;  %v750_v37 = vadd.f32 %v713_v35, %v637_v10 }
 0x21f   : > { %760 = vst [vmem:[#allocation4 + $0x18] sm:$0xff] %v744_v3  ;;  %768 = vst [vmem:[#allocation4 + $0x58] sm:$0xff] %v752_v11 }
 0x220   : > { %758 = vst [vmem:[#allocation4 + $0x8] sm:$0xff] %v742_v36  ;;  %766 = vst [vmem:[#allocation4 + $0x48] sm:$0xff] %v750_v37 }
 0x222   : > { %v1712_v42 = vpop.f32.mrb[4].mxu0  ;;  %v1720_v43 = vpop.f32.mrb[4].mxu1 }
 0x223   : > { %v747_v46 = vadd.f32 %v1712_v42, %v634_v38  ;;  %v755_v47 = vadd.f32 %v1720_v43, %v642_v39  ;;  %v694_v48 = vpop.f32.mrb[5].mxu0  ;;  %v726_v49 = vpop.f32.mrb[5].mxu1 }
 0x224   : > { %v745_v52 = vadd.f32 %v694_v48, %v632_v40  ;;  %v753_v53 = vadd.f32 %v726_v49, %v640_v41  ;;  %v1713_v54 = vpop.f32.mrb[6].mxu0  ;;  %v1721_v55 = vpop.f32.mrb[6].mxu1 }
 0x225   : > { %763 = vst [vmem:[#allocation4 + $0x30] sm:$0xff] %v747_v46  ;;  %771 = vst [vmem:[#allocation4 + $0x70] sm:$0xff] %v755_v47  ;;  %v748_v56 = vadd.f32 %v1713_v54, %v635_v44  ;;  %v756_v57 = vadd.f32 %v1721_v55, %v643_v45  ;;  %v697_v58 = vpop.f32.mrb[7].mxu0  ;;  %v729_v59 = vpop.f32.mrb[7].mxu1 }
 0x226   : > { %761 = vst [vmem:[#allocation4 + $0x20] sm:$0xff] %v745_v52  ;;  %769 = vst [vmem:[#allocation4 + $0x60] sm:$0xff] %v753_v53  ;;  %v746_v60 = vadd.f32 %v697_v58, %v633_v50  ;;  %v754_v61 = vadd.f32 %v729_v59, %v641_v51 }
 0x227   : > { %764 = vst [vmem:[#allocation4 + $0x38] sm:$0xff] %v748_v56  ;;  %772 = vst [vmem:[#allocation4 + $0x78] sm:$0xff] %v756_v57 }
 0x228   : > { %762 = vst [vmem:[#allocation4 + $0x28] sm:$0xff] %v746_v60  ;;  %770 = vst [vmem:[#allocation4 + $0x68] sm:$0xff] %v754_v61 }
 0x229 PF: > { %774 = sbr.rel (!%p352_p4) target bundleno = 939 (0x3ab), region = 68  ;;  %v783_v62 = vld [vmem:[%s2381_s2 + $0x40] sm:$0xff] (%p352_p4)  ;;  %v1932_v12 = vmov (%p352_p4), 0   ;;  %v784_v13 = vld [vmem:[%s2381_s2 + $0x48] sm:$0xff] (%p352_p4)  ;;  %v778_v15 = vld [vmem:[%s2381_s2 + $0x18] sm:$0xff] (%p352_p4) }
 0x22a   : > { %v775_v63 = vld [vmem:[%s2381_s2] sm:$0xff] (%p352_p4)  ;;  %1887 = vset.pattern.permute.xlu1 (%p352_p4), %v1932_v12  ;;  %1886 = vset.pattern.permute.xlu0 (%p352_p4), %v1932_v12  ;;  %v776_v14 = vld [vmem:[%s2381_s2 + $0x8] sm:$0xff] (%p352_p4)  ;;  %v777_v16 = vld [vmem:[%s2381_s2 + $0x10] sm:$0xff] (%p352_p4) }
 0x22b   : > { %849 = vperm.xlu1 (%p352_p4), %1887, %v783_v62   ;;  %809 = vperm.xlu0 (%p352_p4), %1886, %v775_v63   ;;  %v1888_v17 = vld [vmem:[%s2382_s3] sm:$0xff] (%p352_p4)   ;;  %v1889_v18 = vld [vmem:[%s2382_s3 + $0x8] sm:$0xff] (%p352_p4)   ;;  %v786_v19 = vld [vmem:[%s2381_s2 + $0x58] sm:$0xff] (%p352_p4) }
 0x22c   : > { %1722 = vmatprep.subr.bf16.mxu0 (%p352_p4), %v1888_v17  ;;  %1818 = vmatprep.subr.bf16.mxu1 (%p352_p4), %v1888_v17  ;;  %v785_v20 = vld [vmem:[%s2381_s2 + $0x50] sm:$0xff] (%p352_p4)  ;;  %v780_v4 = vld [vmem:[%s2381_s2 + $0x28] sm:$0xff] (%p352_p4)  ;;  %v779_v8 = vld [vmem:[%s2381_s2 + $0x20] sm:$0xff] (%p352_p4) }
 0x22d   : > { %1723 = vmatpush3.bf16.msra.mxu0 (%p352_p4), %v1888_v17  ;;  %1826 = vmatpush3.bf16.msra.mxu1 (%p352_p4), %v1888_v17  ;;  %v1890_v21 = vld [vmem:[%s2382_s3 + $0x10] sm:$0xff] (%p352_p4)   ;;  %v1891_v22 = vld [vmem:[%s2382_s3 + $0x18] sm:$0xff] (%p352_p4)   ;;  %v788_v23 = vld [vmem:[%s2381_s2 + $0x68] sm:$0xff] (%p352_p4) }
 0x22e   : > { %1724 = vmatprep.subr.bf16.mxu0 (%p352_p4), %v1889_v18  ;;  %1819 = vmatprep.subr.bf16.mxu1 (%p352_p4), %v1889_v18  ;;  %v787_v24 = vld [vmem:[%s2381_s2 + $0x60] sm:$0xff] (%p352_p4)  ;;  %v782_v26 = vld [vmem:[%s2381_s2 + $0x38] sm:$0xff] (%p352_p4)  ;;  %v781_v0 = vld [vmem:[%s2381_s2 + $0x30] sm:$0xff] (%p352_p4) }
 0x22f   : > { %854 = vperm.xlu1 (%p352_p4), %1887, %v784_v13   ;;  %814 = vperm.xlu0 (%p352_p4), %1886, %v776_v14   ;;  %v1892_v25 = vld [vmem:[%s2382_s3 + $0x20] sm:$0xff] (%p352_p4)   ;;  %v1893_v5 = vld [vmem:[%s2382_s3 + $0x28] sm:$0xff] (%p352_p4)   ;;  %v790_v27 = vld [vmem:[%s2381_s2 + $0x78] sm:$0xff] (%p352_p4) }
 0x230   : > { %v789_v2 = vld [vmem:[%s2381_s2 + $0x70] sm:$0xff]  ;;  %v1895_v28 = vld [vmem:[%s2382_s3 + $0x38] sm:$0xff]   ;;  %v799_v30 = vld [vmem:[#allocation3 + $0x40] sm:$0xff] }
 0x231   : > { %1725 = vmatpush3.bf16.msra.mxu0 %v1889_v18  ;;  %1827 = vmatpush3.bf16.msra.mxu1 %v1889_v18  ;;  %v1894_v9 = vld [vmem:[%s2382_s3 + $0x30] sm:$0xff]   ;;  %v791_v31 = vld [vmem:[#allocation3] sm:$0xff]  ;;  %v800_v10 = vld [vmem:[#allocation3 + $0x48] sm:$0xff] }
 0x232   : > { %1726 = vmatprep.subr.bf16.mxu0 %v1890_v21  ;;  %1820 = vmatprep.subr.bf16.mxu1 %v1890_v21  ;;  %v792_v32 = vld [vmem:[#allocation3 + $0x8] sm:$0xff]  ;;  %v794_v35 = vld [vmem:[#allocation3 + $0x18] sm:$0xff]  ;;  %v793_v36 = vld [vmem:[#allocation3 + $0x10] sm:$0xff] }
 0x233   : > { %824 = vperm.xlu1 %1887, %v778_v15   ;;  %819 = vperm.xlu0 %1886, %v777_v16   ;;  %v802_v43 = vld [vmem:[#allocation3 + $0x58] sm:$0xff]  ;;  %v801_v44 = vld [vmem:[#allocation3 + $0x50] sm:$0xff]  ;;  %v796_v50 = vld [vmem:[#allocation3 + $0x28] sm:$0xff] }
 0x234   : > { %v795_v51 = vld [vmem:[#allocation3 + $0x20] sm:$0xff]  ;;  %v804_v57 = vld [vmem:[#allocation3 + $0x68] sm:$0xff]  ;;  %v798_v12 = vld [vmem:[#allocation3 + $0x38] sm:$0xff] }
 0x235   : > { %1727 = vmatpush3.bf16.msra.mxu0 %v1890_v21  ;;  %1828 = vmatpush3.bf16.msra.mxu1 %v1890_v21  ;;  %v803_v58 = vld [vmem:[#allocation3 + $0x60] sm:$0xff]  ;;  %v797_v13 = vld [vmem:[#allocation3 + $0x30] sm:$0xff] }
 0x236   : > { %1728 = vmatprep.subr.bf16.mxu0 %v1891_v22  ;;  %1821 = vmatprep.subr.bf16.mxu1 %v1891_v22 }
 0x237   : > { %864 = vperm.xlu1 %1887, %v786_v19   ;;  %859 = vperm.xlu0 %1886, %v785_v20   ;;  %v806_v19 = vld [vmem:[#allocation3 + $0x78] sm:$0xff]  ;;  %v805_v20 = vld [vmem:[#allocation3 + $0x70] sm:$0xff] }
 0x239   : > { %1729 = vmatpush3.bf16.msra.mxu0 %v1891_v22  ;;  %1829 = vmatpush3.bf16.msra.mxu1 %v1891_v22 }
 0x23a   : > { %1730 = vmatprep.subr.bf16.mxu0 %v1892_v25  ;;  %1822 = vmatprep.subr.bf16.mxu1 %v1892_v25 }
 0x23b   : > { %834 = vperm.xlu1 %1887, %v780_v4   ;;  %829 = vperm.xlu0 %1886, %v779_v8  }
 0x23d   : > { %1731 = vmatpush3.bf16.msra.mxu0 %v1892_v25  ;;  %1830 = vmatpush3.bf16.msra.mxu1 %v1892_v25  ;;  %v2211_v25 = vld [vmem:[%s2383_s4] ss:$0 sm:$0xff] }
 0x23e   : > { %1732 = vmatprep.subr.bf16.mxu0 %v1893_v5  ;;  %1823 = vmatprep.subr.bf16.mxu1 %v1893_v5 }
 0x23f   : > { %874 = vperm.xlu1 %1887, %v788_v23   ;;  %869 = vperm.xlu0 %1886, %v787_v24  }
 0x241   : > { %1733 = vmatpush3.bf16.msra.mxu0 %v1893_v5  ;;  %1831 = vmatpush3.bf16.msra.mxu1 %v1893_v5 }
 0x242   : > { %1734 = vmatprep.subr.bf16.mxu0 %v1894_v9  ;;  %1824 = vmatprep.subr.bf16.mxu1 %v1894_v9 }
 0x243   : > { %844 = vperm.xlu1 %1887, %v782_v26   ;;  %839 = vperm.xlu0 %1886, %v781_v0  }
 0x245   : > { %1735 = vmatpush3.bf16.msra.mxu0 %v1894_v9  ;;  %1832 = vmatpush3.bf16.msra.mxu1 %v1894_v9 }
 0x246   : > { %1736 = vmatprep.subr.bf16.mxu0 %v1895_v28  ;;  %1825 = vmatprep.subr.bf16.mxu1 %v1895_v28 }
 0x247   : > { %884 = vperm.xlu1 %1887, %v790_v27   ;;  %879 = vperm.xlu0 %1886, %v789_v2  }
 0x249   : > { %1737 = vmatpush3.bf16.msra.mxu0 %v1895_v28  ;;  %1833 = vmatpush3.bf16.msra.mxu1 %v1895_v28 }
 0x2aa   : > { %v2160_v29 = vpop.permute.xlu1 %849  ;;  %v2162_v6 = vpop.permute.xlu0 %809 }
 0x2ab   : > { %v895_v33 = vmul.f32 %v2160_v29, %v799_v30  ;;  %v887_v3 = vmul.f32 %v2162_v6, %v791_v31 }
 0x2ae   : > { %v2164_v1 = vpop.permute.xlu1 %854  ;;  %v2166_v7 = vpop.permute.xlu0 %814 }
 0x2af   : > { %v896_v11 = vmul.f32 %v2164_v1, %v800_v10  ;;  %v888_v34 = vmul.f32 %v2166_v7, %v792_v32 }
 0x2b1   : > { %v903_v37 = vpack.c.bf16 %v888_v34, %v887_v3  ;;  %v907_v38 = vpack.c.bf16 %v896_v11, %v895_v33 }
 0x2b2   : > { %v2172_v39 = vpop.permute.xlu1 %824  ;;  %v2174_v40 = vpop.permute.xlu0 %819 }
 0x2b3   : > { %v890_v41 = vmul.f32 %v2172_v39, %v794_v35  ;;  %v889_v42 = vmul.f32 %v2174_v40, %v793_v36  ;;  %1738 = vmatprep.mubr.bf16.mxu0 %v903_v37  ;;  %1746 = vmatprep.mubr.bf16.mxu1 %v907_v38 }
 0x2b5   : > { %v904_v45 = vpack.c.bf16 %v890_v41, %v889_v42 }
 0x2b6   : > { %v2178_v46 = vpop.permute.xlu1 %864  ;;  %v2180_v47 = vpop.permute.xlu0 %859 }
 0x2b7   : > { %v898_v48 = vmul.f32 %v2178_v46, %v802_v43  ;;  %v897_v49 = vmul.f32 %v2180_v47, %v801_v44  ;;  %1739 = vmatmul.mubr.bf16.vlgmr.msra.gmra.mrb[0].mxu0 %v904_v45 }
 0x2b9   : > { %v908_v52 = vpack.c.bf16 %v898_v48, %v897_v49 }
 0x2ba   : > { %v2184_v53 = vpop.permute.xlu1 %834  ;;  %v2186_v54 = vpop.permute.xlu0 %829 }
 0x2bb   : > { %v892_v55 = vmul.f32 %v2184_v53, %v796_v50  ;;  %v891_v56 = vmul.f32 %v2186_v54, %v795_v51  ;;  %1747 = vmatmul.mubr.bf16.vlgmr.msra.gmra.mrb[0].mxu1 %v908_v52 }
 0x2bd   : > { %v905_v59 = vpack.c.bf16 %v892_v55, %v891_v56 }
 0x2be   : > { %v2190_v60 = vpop.permute.xlu1 %874  ;;  %v2192_v61 = vpop.permute.xlu0 %869 }
 0x2bf   : > { %v900_v62 = vmul.f32 %v2190_v60, %v804_v57  ;;  %v899_v63 = vmul.f32 %v2192_v61, %v803_v58  ;;  %1742 = vmatprep.mubr.bf16.mxu0 %v905_v59 }
 0x2c1   : > { %v909_v14 = vpack.c.bf16 %v900_v62, %v899_v63 }
 0x2c2   : > { %v2196_v15 = vpop.permute.xlu1 %844  ;;  %v2198_v16 = vpop.permute.xlu0 %839 }
 0x2c3   : > { %v894_v17 = vmul.f32 %v2196_v15, %v798_v12  ;;  %v893_v18 = vmul.f32 %v2198_v16, %v797_v13  ;;  %1750 = vmatprep.mubr.bf16.mxu1 %v909_v14 }
 0x2c5   : > { %v906_v21 = vpack.c.bf16 %v894_v17, %v893_v18 }
 0x2c6   : > { %v2202_v4 = vpop.permute.xlu1 %884  ;;  %v2204_v8 = vpop.permute.xlu0 %879 }
 0x2c7   : > { %v902_v22 = vmul.f32 %v2202_v4, %v806_v19  ;;  %v901_v23 = vmul.f32 %v2204_v8, %v805_v20  ;;  %1743 = vmatmul.mubr.bf16.gmra.mrb[4].mxu0 %v906_v21 }
 0x2c9   : > { %v910_v24 = vpack.c.bf16 %v902_v22, %v901_v23 }
 0x2cb   : > { %1751 = vmatmul.mubr.bf16.gmra.mrb[4].mxu1 %v910_v24 }
 0x38a   : > { %v1740_v26 = vpop.f32.mrb[0].mxu0 }
 0x38b   : > { %v1025_v0 = vadd.f32 %v1740_v26, %v2211_v25  ;;  %v1016_v5 = vpop.f32.mrb[1].mxu0 }
 0x38c   : > { %v1017_v27 = vadd.f32 %v2211_v25, %v1016_v5  ;;  %v1741_v2 = vpop.f32.mrb[2].mxu0 }
 0x38d   : > { %v1081_v9 = vmax.f32 %v1025_v0, 0.0  ;;  %v1028_v28 = vadd.f32 %v1741_v2, %v2211_v25  ;;  %v1019_v30 = vpop.f32.mrb[3].mxu0 }
 0x38e   : > { %v1079_v31 = vmax.f32 %v1017_v27, 0.0  ;;  %v1020_v10 = vadd.f32 %v2211_v25, %v1019_v30  ;;  %v1748_v32 = vpop.f32.mrb[0].mxu1 }
 0x38f   : > { %v1082_v33 = vmax.f32 %v1028_v28, 0.0  ;;  %v1057_v3 = vadd.f32 %v1748_v32, %v2211_v25  ;;  %v1048_v11 = vpop.f32.mrb[1].mxu1  ;;  %v1098_v37 = vmul.f32 %v1081_v9, %v2174_v40 }
 0x390   : > { %v1080_v34 = vmax.f32 %v1020_v10, 0.0  ;;  %v1049_v35 = vadd.f32 %v2211_v25, %v1048_v11  ;;  %v1749_v36 = vpop.f32.mrb[2].mxu1  ;;  %v1096_v44 = vmul.f32 %v1079_v31, %v2162_v6 }
 0x391   : > { %v1099_v38 = vmul.f32 %v1082_v33, %v2172_v39  ;;  %v1089_v41 = vmax.f32 %v1057_v3, 0.0  ;;  %v1060_v42 = vadd.f32 %v1749_v36, %v2211_v25  ;;  %v1051_v43 = vpop.f32.mrb[3].mxu1 }
 0x392   : > { %v1097_v45 = vmul.f32 %v1080_v34, %v2166_v7  ;;  %v1087_v48 = vmax.f32 %v1049_v35, 0.0  ;;  %v1052_v49 = vadd.f32 %v2211_v25, %v1051_v43 }
 0x393   : > { %v1113_v50 = vpack.c.bf16 %v1099_v38, %v1098_v37  ;;  %v1090_v51 = vmax.f32 %v1060_v42, 0.0  ;;  %v1106_v40 = vmul.f32 %v1089_v41, %v2180_v47 }
 0x394   : > { %v1112_v52 = vpack.c.bf16 %v1097_v45, %v1096_v44  ;;  %v1088_v55 = vmax.f32 %v1052_v49, 0.0  ;;  %v1104_v56 = vmul.f32 %v1087_v48, %v2160_v29 }
 0x395   : > { %1125 = vst [vmem:[#allocation2 + $0x8] sm:$0xff] %v1113_v50  ;;  %v1107_v39 = vmul.f32 %v1090_v51, %v2178_v46 }
 0x396   : > { %1124 = vst [vmem:[#allocation2] sm:$0xff] %v1112_v52  ;;  %v1105_v57 = vmul.f32 %v1088_v55, %v2164_v1 }
 0x397   : > { %v1117_v6 = vpack.c.bf16 %v1107_v39, %v1106_v40 }
 0x398   : > { %v1116_v58 = vpack.c.bf16 %v1105_v57, %v1104_v56 }
 0x399   : > { %1129 = vst [vmem:[#allocation2 + $0x28] sm:$0xff] %v1117_v6 }
 0x39a   : > { %1128 = vst [vmem:[#allocation2 + $0x20] sm:$0xff] %v1116_v58  ;;  %v1744_v7 = vpop.f32.mrb[4].mxu0 }
 0x39b   : > { %v1041_v59 = vadd.f32 %v1744_v7, %v2211_v25  ;;  %v1032_v62 = vpop.f32.mrb[5].mxu0 }
 0x39c   : > { %v1033_v63 = vadd.f32 %v2211_v25, %v1032_v62  ;;  %v1745_v12 = vpop.f32.mrb[6].mxu0 }
 0x39d   : > { %v1085_v13 = vmax.f32 %v1041_v59, 0.0  ;;  %v1044_v47 = vadd.f32 %v1745_v12, %v2211_v25  ;;  %v1035_v46 = vpop.f32.mrb[7].mxu0 }
 0x39e   : > { %v1083_v14 = vmax.f32 %v1033_v63, 0.0  ;;  %v1036_v29 = vadd.f32 %v2211_v25, %v1035_v46  ;;  %v1752_v17 = vpop.f32.mrb[4].mxu1 }
 0x39f   : > { %v1086_v1 = vmax.f32 %v1044_v47, 0.0  ;;  %v1073_v18 = vadd.f32 %v1752_v17, %v2211_v25  ;;  %v1064_v19 = vpop.f32.mrb[5].mxu1  ;;  %v1102_v23 = vmul.f32 %v1085_v13, %v2198_v16 }
 0x3a0   : > { %v1084_v20 = vmax.f32 %v1036_v29, 0.0  ;;  %v1065_v21 = vadd.f32 %v2211_v25, %v1064_v19  ;;  %v1753_v22 = vpop.f32.mrb[6].mxu1  ;;  %v1100_v27 = vmul.f32 %v1083_v14, %v2186_v54 }
 0x3a1   : > { %v1103_v24 = vmul.f32 %v1086_v1, %v2196_v15  ;;  %v1093_v26 = vmax.f32 %v1073_v18, 0.0  ;;  %v1076_v0 = vadd.f32 %v1753_v22, %v2211_v25  ;;  %v1067_v5 = vpop.f32.mrb[7].mxu1 }
 0x3a2   : > { %v1101_v2 = vmul.f32 %v1084_v20, %v2184_v53  ;;  %v1091_v9 = vmax.f32 %v1065_v21, 0.0  ;;  %v1068_v28 = vadd.f32 %v2211_v25, %v1067_v5 }
 0x3a3   : > { %v1115_v30 = vpack.c.bf16 %v1103_v24, %v1102_v23  ;;  %v1094_v31 = vmax.f32 %v1076_v0, 0.0  ;;  %v1110_v16 = vmul.f32 %v1093_v26, %v2204_v8 }
 0x3a4   : > { %v1114_v10 = vpack.c.bf16 %v1101_v2, %v1100_v27  ;;  %v1092_v32 = vmax.f32 %v1068_v28, 0.0  ;;  %v1108_v33 = vmul.f32 %v1091_v9, %v2192_v61 }
 0x3a5   : > { %1127 = vst [vmem:[#allocation2 + $0x18] sm:$0xff] %v1115_v30  ;;  %v1111_v15 = vmul.f32 %v1094_v31, %v2202_v4 }
 0x3a6   : > { %1126 = vst [vmem:[#allocation2 + $0x10] sm:$0xff] %v1114_v10  ;;  %v1109_v3 = vmul.f32 %v1092_v32, %v2190_v60 }
 0x3a7   : > { %v1119_v54 = vpack.c.bf16 %v1111_v15, %v1110_v16 }
 0x3a8   : > { %v1118_v11 = vpack.c.bf16 %v1109_v3, %v1108_v33 }
 0x3a9   : > { %1131 = vst [vmem:[#allocation2 + $0x38] sm:$0xff] %v1119_v54 }
 0x3aa   : > { %1130 = vst [vmem:[#allocation2 + $0x30] sm:$0xff] %v1118_v11 }
 0x3ab PF: > { %1133 = sbr.rel (!%p374_p5) target bundleno = 1319 (0x527), region = 72  ;;  %v1142_v53 = vld [vmem:[%s2381_s2 + $0x40] sm:$0xff] (%p374_p5)  ;;  %v1933_v8 = vmov (%p374_p5), 0   ;;  %v1143_v60 = vld [vmem:[%s2381_s2 + $0x48] sm:$0xff] (%p374_p5)  ;;  %v1137_v25 = vld [vmem:[%s2381_s2 + $0x18] sm:$0xff] (%p374_p5) }
 0x3ac   : > { %v1134_v4 = vld [vmem:[%s2381_s2] sm:$0xff] (%p374_p5)  ;;  %1897 = vset.pattern.permute.xlu1 (%p374_p5), %v1933_v8  ;;  %1896 = vset.pattern.permute.xlu0 (%p374_p5), %v1933_v8  ;;  %v1135_v61 = vld [vmem:[%s2381_s2 + $0x8] sm:$0xff] (%p374_p5)  ;;  %v1136_v34 = vld [vmem:[%s2381_s2 + $0x10] sm:$0xff] (%p374_p5) }
 0x3ad   : > { %1208 = vperm.xlu1 (%p374_p5), %1897, %v1142_v53   ;;  %1168 = vperm.xlu0 (%p374_p5), %1896, %v1134_v4   ;;  %v1898_v35 = vld [vmem:[%s2384_s5] sm:$0xff] (%p374_p5)   ;;  %v1899_v36 = vld [vmem:[%s2384_s5 + $0x8] sm:$0xff] (%p374_p5)   ;;  %v1145_v37 = vld [vmem:[%s2381_s2 + $0x58] sm:$0xff] (%p374_p5) }
 0x3ae   : > { %1754 = vmatprep.subr.bf16.mxu0 (%p374_p5), %v1898_v35  ;;  %1834 = vmatprep.subr.bf16.mxu1 (%p374_p5), %v1898_v35  ;;  %v1144_v38 = vld [vmem:[%s2381_s2 + $0x50] sm:$0xff] (%p374_p5)  ;;  %v1139_v42 = vld [vmem:[%s2381_s2 + $0x28] sm:$0xff] (%p374_p5)  ;;  %v1138_v43 = vld [vmem:[%s2381_s2 + $0x20] sm:$0xff] (%p374_p5) }
 0x3af   : > { %1755 = vmatpush3.bf16.msra.mxu0 (%p374_p5), %v1898_v35  ;;  %1842 = vmatpush3.bf16.msra.mxu1 (%p374_p5), %v1898_v35  ;;  %v1900_v41 = vld [vmem:[%s2384_s5 + $0x10] sm:$0xff] (%p374_p5)   ;;  %v1901_v44 = vld [vmem:[%s2384_s5 + $0x18] sm:$0xff] (%p374_p5)   ;;  %v1147_v45 = vld [vmem:[%s2381_s2 + $0x68] sm:$0xff] (%p374_p5) }
 0x3b0   : > { %1756 = vmatprep.subr.bf16.mxu0 (%p374_p5), %v1899_v36  ;;  %1835 = vmatprep.subr.bf16.mxu1 (%p374_p5), %v1899_v36  ;;  %v1146_v48 = vld [vmem:[%s2381_s2 + $0x60] sm:$0xff] (%p374_p5)  ;;  %v1141_v50 = vld [vmem:[%s2381_s2 + $0x38] sm:$0xff] (%p374_p5)  ;;  %v1140_v51 = vld [vmem:[%s2381_s2 + $0x30] sm:$0xff] (%p374_p5) }
 0x3b1   : > { %1213 = vperm.xlu1 (%p374_p5), %1897, %v1143_v60   ;;  %1173 = vperm.xlu0 (%p374_p5), %1896, %v1135_v61   ;;  %v1902_v49 = vld [vmem:[%s2384_s5 + $0x20] sm:$0xff] (%p374_p5)   ;;  %v1903_v52 = vld [vmem:[%s2384_s5 + $0x28] sm:$0xff] (%p374_p5)   ;;  %v1149_v55 = vld [vmem:[%s2381_s2 + $0x78] sm:$0xff] (%p374_p5) }
 0x3b2   : > { %v1148_v40 = vld [vmem:[%s2381_s2 + $0x70] sm:$0xff]  ;;  %v1905_v56 = vld [vmem:[%s2384_s5 + $0x38] sm:$0xff]   ;;  %v1158_v58 = vld [vmem:[#allocation4 + $0x40] sm:$0xff] }
 0x3b3   : > { %1757 = vmatpush3.bf16.msra.mxu0 %v1899_v36  ;;  %1843 = vmatpush3.bf16.msra.mxu1 %v1899_v36  ;;  %v1904_v39 = vld [vmem:[%s2384_s5 + $0x30] sm:$0xff]   ;;  %v1150_v7 = vld [vmem:[#allocation4] sm:$0xff]  ;;  %v1159_v59 = vld [vmem:[#allocation4 + $0x48] sm:$0xff] }
 0x3b4   : > { %1758 = vmatprep.subr.bf16.mxu0 %v1900_v41  ;;  %1836 = vmatprep.subr.bf16.mxu1 %v1900_v41  ;;  %v1151_v62 = vld [vmem:[#allocation4 + $0x8] sm:$0xff]  ;;  %v1153_v29 = vld [vmem:[#allocation4 + $0x18] sm:$0xff]  ;;  %v1152_v17 = vld [vmem:[#allocation4 + $0x10] sm:$0xff] }
 0x3b5   : > { %1183 = vperm.xlu1 %1897, %v1137_v25   ;;  %1178 = vperm.xlu0 %1896, %v1136_v34   ;;  %v1161_v23 = vld [vmem:[#allocation4 + $0x58] sm:$0xff]  ;;  %v1160_v24 = vld [vmem:[#allocation4 + $0x50] sm:$0xff]  ;;  %v1155_v9 = vld [vmem:[#allocation4 + $0x28] sm:$0xff] }
 0x3b6   : > { %v1154_v28 = vld [vmem:[#allocation4 + $0x20] sm:$0xff]  ;;  %v1163_v15 = vld [vmem:[#allocation4 + $0x68] sm:$0xff]  ;;  %v1157_v8 = vld [vmem:[#allocation4 + $0x38] sm:$0xff] }
 0x3b7   : > { %1759 = vmatpush3.bf16.msra.mxu0 %v1900_v41  ;;  %1844 = vmatpush3.bf16.msra.mxu1 %v1900_v41  ;;  %v1162_v33 = vld [vmem:[#allocation4 + $0x60] sm:$0xff]  ;;  %v1156_v60 = vld [vmem:[#allocation4 + $0x30] sm:$0xff] }
 0x3b8   : > { %1760 = vmatprep.subr.bf16.mxu0 %v1901_v44  ;;  %1837 = vmatprep.subr.bf16.mxu1 %v1901_v44 }
 0x3b9   : > { %1223 = vperm.xlu1 %1897, %v1145_v37   ;;  %1218 = vperm.xlu0 %1896, %v1144_v38   ;;  %v1165_v37 = vld [vmem:[#allocation4 + $0x78] sm:$0xff]  ;;  %v1164_v38 = vld [vmem:[#allocation4 + $0x70] sm:$0xff] }
 0x3bb   : > { %1761 = vmatpush3.bf16.msra.mxu0 %v1901_v44  ;;  %1845 = vmatpush3.bf16.msra.mxu1 %v1901_v44 }
 0x3bc   : > { %1762 = vmatprep.subr.bf16.mxu0 %v1902_v49  ;;  %1838 = vmatprep.subr.bf16.mxu1 %v1902_v49 }
 0x3bd   : > { %1193 = vperm.xlu1 %1897, %v1139_v42   ;;  %1188 = vperm.xlu0 %1896, %v1138_v43  }
 0x3bf   : > { %1763 = vmatpush3.bf16.msra.mxu0 %v1902_v49  ;;  %1846 = vmatpush3.bf16.msra.mxu1 %v1902_v49  ;;  %v1579_v49 = vld [vmem:[%s2385_s6] ss:$0 sm:$0xff] }
 0x3c0   : > { %1764 = vmatprep.subr.bf16.mxu0 %v1903_v52  ;;  %1839 = vmatprep.subr.bf16.mxu1 %v1903_v52 }
 0x3c1   : > { %1233 = vperm.xlu1 %1897, %v1147_v45   ;;  %1228 = vperm.xlu0 %1896, %v1146_v48  }
 0x3c3   : > { %1765 = vmatpush3.bf16.msra.mxu0 %v1903_v52  ;;  %1847 = vmatpush3.bf16.msra.mxu1 %v1903_v52 }
 0x3c4   : > { %1766 = vmatprep.subr.bf16.mxu0 %v1904_v39  ;;  %1840 = vmatprep.subr.bf16.mxu1 %v1904_v39 }
 0x3c5   : > { %1203 = vperm.xlu1 %1897, %v1141_v50   ;;  %1198 = vperm.xlu0 %1896, %v1140_v51  }
 0x3c7   : > { %1767 = vmatpush3.bf16.msra.mxu0 %v1904_v39  ;;  %1848 = vmatpush3.bf16.msra.mxu1 %v1904_v39 }
 0x3c8   : > { %1768 = vmatprep.subr.bf16.mxu0 %v1905_v56  ;;  %1841 = vmatprep.subr.bf16.mxu1 %v1905_v56 }
 0x3c9   : > { %1243 = vperm.xlu1 %1897, %v1149_v55   ;;  %1238 = vperm.xlu0 %1896, %v1148_v40  }
 0x3cb   : > { %1769 = vmatpush3.bf16.msra.mxu0 %v1905_v56  ;;  %1849 = vmatpush3.bf16.msra.mxu1 %v1905_v56 }
 0x42c   : > { %v1209_v57 = vpop.permute.xlu1 %1208  ;;  %v1169_v6 = vpop.permute.xlu0 %1168 }
 0x42d   : > { %v1254_v13 = vmul.f32 %v1209_v57, %v1158_v58  ;;  %v1246_v47 = vmul.f32 %v1169_v6, %v1150_v7 }
 0x430   : > { %v1214_v63 = vpop.permute.xlu1 %1213  ;;  %v1174_v12 = vpop.permute.xlu0 %1173 }
 0x431   : > { %v1255_v46 = vmul.f32 %v1214_v63, %v1159_v59  ;;  %v1247_v14 = vmul.f32 %v1174_v12, %v1151_v62 }
 0x433   : > { %v1262_v1 = vpack.c.bf16 %v1247_v14, %v1246_v47  ;;  %v1266_v18 = vpack.c.bf16 %v1255_v46, %v1254_v13 }
 0x434   : > { %v1184_v19 = vpop.permute.xlu1 %1183  ;;  %v1179_v20 = vpop.permute.xlu0 %1178 }
 0x435   : > { %v1249_v21 = vmul.f32 %v1184_v19, %v1153_v29  ;;  %v1248_v22 = vmul.f32 %v1179_v20, %v1152_v17  ;;  %1770 = vmatprep.mubr.bf16.mxu0 %v1262_v1  ;;  %1778 = vmatprep.mubr.bf16.mxu1 %v1266_v18 }
 0x437   : > { %v1263_v26 = vpack.c.bf16 %v1249_v21, %v1248_v22 }
 0x438   : > { %v1224_v0 = vpop.permute.xlu1 %1223  ;;  %v1219_v5 = vpop.permute.xlu0 %1218 }
 0x439   : > { %v1257_v27 = vmul.f32 %v1224_v0, %v1161_v23  ;;  %v1256_v2 = vmul.f32 %v1219_v5, %v1160_v24  ;;  %1771 = vmatmul.mubr.bf16.vlgmr.msra.gmra.mrb[0].mxu0 %v1263_v26 }
 0x43b   : > { %v1267_v30 = vpack.c.bf16 %v1257_v27, %v1256_v2 }
 0x43c   : > { %v1194_v31 = vpop.permute.xlu1 %1193  ;;  %v1189_v10 = vpop.permute.xlu0 %1188 }
 0x43d   : > { %v1251_v32 = vmul.f32 %v1194_v31, %v1155_v9  ;;  %v1250_v16 = vmul.f32 %v1189_v10, %v1154_v28  ;;  %1779 = vmatmul.mubr.bf16.vlgmr.msra.gmra.mrb[0].mxu1 %v1267_v30 }
 0x43f   : > { %v1264_v3 = vpack.c.bf16 %v1251_v32, %v1250_v16 }
 0x440   : > { %v1234_v54 = vpop.permute.xlu1 %1233  ;;  %v1229_v11 = vpop.permute.xlu0 %1228 }
 0x441   : > { %v1259_v53 = vmul.f32 %v1234_v54, %v1163_v15  ;;  %v1258_v4 = vmul.f32 %v1229_v11, %v1162_v33  ;;  %1774 = vmatprep.mubr.bf16.mxu0 %v1264_v3 }
 0x443   : > { %v1268_v61 = vpack.c.bf16 %v1259_v53, %v1258_v4 }
 0x444   : > { %v1204_v25 = vpop.permute.xlu1 %1203  ;;  %v1199_v34 = vpop.permute.xlu0 %1198 }
 0x445   : > { %v1253_v35 = vmul.f32 %v1204_v25, %v1157_v8  ;;  %v1252_v36 = vmul.f32 %v1199_v34, %v1156_v60  ;;  %1782 = vmatprep.mubr.bf16.mxu1 %v1268_v61 }
 0x447   : > { %v1265_v41 = vpack.c.bf16 %v1253_v35, %v1252_v36 }
 0x448   : > { %v1244_v42 = vpop.permute.xlu1 %1243  ;;  %v1239_v43 = vpop.permute.xlu0 %1238 }
 0x449   : > { %v1261_v44 = vmul.f32 %v1244_v42, %v1165_v37  ;;  %v1260_v45 = vmul.f32 %v1239_v43, %v1164_v38  ;;  %1775 = vmatmul.mubr.bf16.gmra.mrb[4].mxu0 %v1265_v41 }
 0x44b   : > { %v1269_v48 = vpack.c.bf16 %v1261_v44, %v1260_v45 }
 0x44d   : > { %1783 = vmatmul.mubr.bf16.gmra.mrb[4].mxu1 %v1269_v48 }
 0x50c   : > { %v1772_v50 = vpop.f32.mrb[0].mxu0 }
 0x50d   : > { %v1384_v51 = vadd.f32 %v1772_v50, %v1579_v49  ;;  %v1375_v52 = vpop.f32.mrb[1].mxu0 }
 0x50e   : > { %v1376_v55 = vadd.f32 %v1579_v49, %v1375_v52  ;;  %v1773_v40 = vpop.f32.mrb[2].mxu0 }
 0x50f   : > { %1440 = vst [vmem:[%s2386_s7 + $0x10] sm:$0xff] %v1384_v51  ;;  %v1387_v39 = vadd.f32 %v1773_v40, %v1579_v49  ;;  %v1378_v56 = vpop.f32.mrb[3].mxu0 }
 0x510   : > { %1438 = vst [vmem:[%s2386_s7] sm:$0xff] %v1376_v55  ;;  %v1379_v57 = vadd.f32 %v1579_v49, %v1378_v56  ;;  %v1780_v6 = vpop.f32.mrb[0].mxu1 }
 0x511   : > { %1441 = vst [vmem:[%s2386_s7 + $0x18] sm:$0xff] %v1387_v39  ;;  %v1416_v58 = vadd.f32 %v1780_v6, %v1579_v49  ;;  %v1407_v7 = vpop.f32.mrb[1].mxu1 }
 0x512   : > { %1439 = vst [vmem:[%s2386_s7 + $0x8] sm:$0xff] %v1379_v57  ;;  %v1408_v59 = vadd.f32 %v1579_v49, %v1407_v7  ;;  %v1781_v62 = vpop.f32.mrb[2].mxu1 }
 0x513   : > { %1448 = vst [vmem:[%s2386_s7 + $0x50] sm:$0xff] %v1416_v58  ;;  %v1419_v63 = vadd.f32 %v1781_v62, %v1579_v49  ;;  %v1410_v12 = vpop.f32.mrb[3].mxu1 }
 0x514   : > { %1446 = vst [vmem:[%s2386_s7 + $0x40] sm:$0xff] %v1408_v59  ;;  %v1411_v13 = vadd.f32 %v1579_v49, %v1410_v12 }
 0x515   : > { %1449 = vst [vmem:[%s2386_s7 + $0x58] sm:$0xff] %v1419_v63 }
 0x516   : > { %1447 = vst [vmem:[%s2386_s7 + $0x48] sm:$0xff] %v1411_v13 }
 0x51c   : > { %v1776_v47 = vpop.f32.mrb[4].mxu0 }
 0x51d   : > { %v1400_v46 = vadd.f32 %v1776_v47, %v1579_v49  ;;  %v1391_v14 = vpop.f32.mrb[5].mxu0 }
 0x51e   : > { %v1392_v29 = vadd.f32 %v1579_v49, %v1391_v14  ;;  %v1777_v17 = vpop.f32.mrb[6].mxu0 }
 0x51f   : > { %1444 = vst [vmem:[%s2386_s7 + $0x30] sm:$0xff] %v1400_v46  ;;  %v1403_v1 = vadd.f32 %v1777_v17, %v1579_v49  ;;  %v1394_v18 = vpop.f32.mrb[7].mxu0 }
 0x520   : > { %1442 = vst [vmem:[%s2386_s7 + $0x20] sm:$0xff] %v1392_v29  ;;  %v1395_v19 = vadd.f32 %v1579_v49, %v1394_v18  ;;  %v1784_v20 = vpop.f32.mrb[4].mxu1 }
 0x521   : > { %1445 = vst [vmem:[%s2386_s7 + $0x38] sm:$0xff] %v1403_v1  ;;  %v1432_v21 = vadd.f32 %v1784_v20, %v1579_v49  ;;  %v1423_v22 = vpop.f32.mrb[5].mxu1 }
 0x522   : > { %1443 = vst [vmem:[%s2386_s7 + $0x28] sm:$0xff] %v1395_v19  ;;  %v1424_v23 = vadd.f32 %v1579_v49, %v1423_v22  ;;  %v1785_v24 = vpop.f32.mrb[6].mxu1 }
 0x523   : > { %1452 = vst [vmem:[%s2386_s7 + $0x70] sm:$0xff] %v1432_v21  ;;  %v1435_v26 = vadd.f32 %v1785_v24, %v1579_v49  ;;  %v1426_v0 = vpop.f32.mrb[7].mxu1 }
 0x524   : > { %1450 = vst [vmem:[%s2386_s7 + $0x60] sm:$0xff] %v1424_v23  ;;  %v1427_v5 = vadd.f32 %v1579_v49, %v1426_v0 }
 0x525   : > { %1453 = vst [vmem:[%s2386_s7 + $0x78] sm:$0xff] %v1435_v26 }
 0x526   : > { %1451 = vst [vmem:[%s2386_s7 + $0x68] sm:$0xff] %v1427_v5 }
 0x527 PF: > { %s17_s26 = sadd.s32 1, %s1928_s26   ;;  %s2387_s24 = smov %s1924_s25 }
 0x528   : > { %p14_p8 = scmp.ge.s32.totalorder %s17_s26, 4   ;;  %s2388_s25 = smov %s2390_s27 }
 0x52a   :  { %16 = sbr.rel (!%p14_p8) target bundleno = 2 (0x2), region = 108 }

</bundles_post_ra>
